<compile_context>
chip_gen: v7x
topology: tpu7x:2x2x1
jax: 0.10.0
libtpu: 0.0.40
codegen_flags: <defaults>
</compile_context>

<pallas_src>
import numpy as np
import jax
import jax.numpy as jnp
from jax.experimental import pallas as pl
from jax.experimental.pallas import tpu as pltpu

try:  # use scipy's Hungarian if available; otherwise the O(n^3) fallback below
    from scipy.optimize import linear_sum_assignment as _scipy_lsa
except Exception:  # pragma: no cover
    _scipy_lsa = None

P_PAD = 128       # padded number of points per timestep (lane axis)
K_PAD = 16        # padded number of predicted instance ids (columns)
N_PAD = 16        # padded "num" = max(gt_num, predict_num) (and max gt labels)
BOX_PAD = 8       # 7 box params padded to 8
TB = 8            # timesteps per grid step (blocked grid)
OUT_ROWS = 8 + N_PAD          # 8 box rows + N_PAD cost rows
OUT_W = OUT_ROWS * K_PAD      # 384 lanes, multiple of 128 -> lane-dense store
L1_W = N_PAD * BOX_PAD        # 128 lanes for the L1 kernel
BIG = 1e30
PAD_ID = -1e9     # id value for padded points / padded queries (never equals a real id)

_PARALLEL_1D = pltpu.CompilerParams(dimension_semantics=("parallel",))


# ----------------------------------------------------------------------------
# Pallas kernels
# ----------------------------------------------------------------------------
def _bbox_cdist_kernel(pts_ref, ids_ref, gt_ref, out_ref):
    # pts_ref: (TB, 8, P_PAD)        rows 0..2 = x,y,z ; row 3 = instance id (PAD_ID pad)
    # ids_ref: (TB, K_PAD, 1)        sorted-unique queried instance ids (PAD_ID padded)
    # gt_ref:  (TB, N_PAD, BOX_PAD)  gt boxes (rows = gt instances, 7 params + flag)
    # out_ref: (TB, OUT_W) lane-dense, lanes [r*K_PAD:(r+1)*K_PAD]:
    #   r in [0,8):  box row r = [cx,cy,cz,dx,dy,dz,0,0] per instance column
    #   r in [8,24): squared gt-vs-pred center distance, gt index n = r - 8
    #
    # TODO(synk): found_instance_bounding_box is not defined in the reference file;
    # assumed semantics: axis-aligned bbox (center, extent) per instance id, heading = 0.
    # TODO(synk): instance-id match uses exact float32 equality (safe for small integer ids).
    pts = pts_ref[...]                            # (TB, 8, P_PAD)
    ids = ids_ref[...]                            # (TB, K_PAD, 1)
    gt = gt_ref[...]                              # (TB, N_PAD, BOX_PAD)

    pid = pts[:, 3:4, :]                          # (TB, 1, P_PAD) point instance ids
    match = pid == ids                            # (TB, K_PAD, P_PAD), lane-dense

    mins, maxs = [], []
    for c in range(3):
        v = pts[:, c:c + 1, :]                    # (TB, 1, P_PAD)
        mins.append(jnp.min(jnp.where(match, v, BIG), axis=-1))    # (TB, K_PAD)
        maxs.append(jnp.max(jnp.where(match, v, -BIG), axis=-1))   # (TB, K_PAD)
    ctr = [(mins[c] + maxs[c]) * 0.5 for c in range(3)]
    # Unmatched (padded) instance columns: min=+BIG, max=-BIG -> center = 0 exactly;
    # clamp size to 0 so padded columns yield a zero box (reference torch.zeros default).
    sz = [jnp.maximum(maxs[c] - mins[c], 0.0) for c in range(3)]
    zeros = jnp.zeros_like(ctr[0])

    pieces = ctr + sz + [zeros, zeros]            # 8 x (TB, K_PAD) -> box lanes [0,128)

    # Pairwise gt-center vs pred-center SQUARED distance (sqrt dropped: monotone,
    # Hungarian assignment unchanged). One 16-wide piece per gt row -> lanes [128,384).
    for n in range(N_PAD):
        d2 = jnp.zeros_like(ctr[0])
        for c in range(3):
            diff = gt[:, n, c:c + 1] - ctr[c]     # (TB, 1) - (TB, K_PAD)
            d2 = d2 + diff * diff
        pieces.append(d2)

    out_ref[...] = jnp.concatenate(pieces, axis=-1)   # (TB, 384) single lane-dense store


def _l1_kernel(packed_ref, out_ref):
    # packed_ref: (1, 3, T_PAD, L1_W)  rows = matched gt boxes, matched pred boxes, mask
    # out_ref:    (1, 8, 128)          broadcast of the per-b summed loss
    p = packed_ref[...]
    gt, pr, m = p[0, 0], p[0, 1], p[0, 2]          # (T_PAD, L1_W)
    diff = jnp.abs(gt - pr) * m
    s = jnp.sum(diff, axis=1, keepdims=True)       # (T_PAD, 1)
    cnt = jnp.sum(m, axis=1, keepdims=True)        # (T_PAD, 1)
    per_t = s / jnp.maximum(cnt, 1.0)              # rows with no valid entries -> 0
    total = jnp.sum(per_t)
    out_ref[...] = jnp.broadcast_to(jnp.reshape(total, (1, 1, 1)), out_ref.shape)


# ----------------------------------------------------------------------------
# pallas_call wrappers (jit caches on shapes -> compiled once per shape)
# ----------------------------------------------------------------------------
@jax.jit
def _bbox_cdist_pallas(pts_pad, ids_pad, gt_pad):
    bt_pad = pts_pad.shape[0]
    return pl.pallas_call(
        _bbox_cdist_kernel,
        out_shape=jax.ShapeDtypeStruct((bt_pad, OUT_W), jnp.float32),
        grid=(bt_pad // TB,),
        in_specs=[pl.BlockSpec((TB, 8, P_PAD), lambda g: (g, 0, 0)),
                  pl.BlockSpec((TB, K_PAD, 1), lambda g: (g, 0, 0)),
                  pl.BlockSpec((TB, N_PAD, BOX_PAD), lambda g: (g, 0, 0))],
        out_specs=pl.BlockSpec((TB, OUT_W), lambda g: (g, 0)),
        compiler_params=_PARALLEL_1D,
    )(pts_pad, ids_pad, gt_pad)


@jax.jit
def _l1_pallas(packed):
    b, _, t_pad, w = packed.shape
    return pl.pallas_call(
        _l1_kernel,
        out_shape=jax.ShapeDtypeStruct((b, 8, 128), jnp.float32),
        grid=(b,),
        in_specs=[pl.BlockSpec((1, 3, t_pad, w), lambda i: (i, 0, 0, 0))],
        out_specs=pl.BlockSpec((1, 8, 128), lambda i: (i, 0, 0)),
        compiler_params=_PARALLEL_1D,
    )(packed)


# ----------------------------------------------------------------------------
# Host-side glue (unique ids, Hungarian matching, gathers)
# ----------------------------------------------------------------------------
def linear_sum_assignment_host(cost):
    """Hungarian matching for a square cost matrix (minimization)."""
    if _scipy_lsa is not None:
        r, c = _scipy_lsa(cost)
        return np.asarray(r, np.int64), np.asarray(c, np.int64)
    cost = np.asarray(cost, dtype=np.float64)
    n, m = cost.shape
    assert n == m
    INF = float("inf")
    u = np.zeros(n + 1)
    v = np.zeros(m + 1)
    p = np.zeros(m + 1, dtype=np.int64)
    way = np.zeros(m + 1, dtype=np.int64)
    for i in range(1, n + 1):
        p[0] = i
        j0 = 0
        minv = np.full(m + 1, INF)
        used = np.zeros(m + 1, dtype=bool)
        while True:
            used[j0] = True
            i0 = p[j0]
            delta = INF
            j1 = -1
            for j in range(1, m + 1):
                if not used[j]:
                    cur = cost[i0 - 1, j - 1] - u[i0] - v[j]
                    if cur < minv[j]:
                        minv[j] = cur
                        way[j] = j0
                    if minv[j] < delta:
                        delta = minv[j]
                        j1 = j
            for j in range(m + 1):
                if used[j]:
                    u[p[j]] += delta
                    v[j] -= delta
                else:
                    minv[j] -= delta
            j0 = j1
            if p[j0] == 0:
                break
        while True:
            j1 = way[j0]
            p[j0] = p[j1]
            j0 = j1
            if j0 == 0:
                break
    row_ind = np.arange(n, dtype=np.int64)
    col_ind = np.zeros(n, dtype=np.int64)
    for j in range(1, m + 1):
        if p[j] > 0:
            col_ind[p[j] - 1] = j - 1
    return row_ind, col_ind


def loss_instance_box_forward_batch(output, instance_labels):
    """Returns per-batch-element losses (B,), each equal to the reference forward(b)."""
    seg = np.asarray(jax.device_get(output['consistent_instance_seg']), np.float32)   # (B,T,P,4)
    labels = np.asarray(jax.device_get(instance_labels), np.float32)                  # (B,T,NLAB,8)
    B, T, P = seg.shape[0], seg.shape[1], seg.shape[2]
    NLAB = labels.shape[2]
    assert seg.shape[3] == 4 and labels.shape[3] == BOX_PAD
    assert P <= P_PAD and NLAB <= N_PAD

    BT = B * T
    G = max(2, (BT + TB - 1) // TB)
    if G % 2:
        G += 1                     # even grid -> balanced across v7x's 2 TensorCores
    BT_PAD = G * TB

    # ---- pad once for all B*T timesteps (lane-major points) ----
    pts_pad = np.zeros((BT_PAD, 8, P_PAD), np.float32)
    pts_pad[:, 3, :] = PAD_ID
    ids_pad = np.full((BT_PAD, K_PAD, 1), PAD_ID, np.float32)
    gt_pad = np.zeros((BT_PAD, N_PAD, BOX_PAD), np.float32)

    seg_flat = seg.reshape(BT, P, 4)
    lab_flat = labels.reshape(BT, NLAB, BOX_PAD)
    gt_pad[:BT, :NLAB, :] = lab_flat

    nums = np.zeros((BT,), np.int64)
    if P > 0:
        pts_pad[:BT, :4, :P] = np.transpose(seg_flat, (0, 2, 1))   # x,y,z,id on sublanes
        for i in range(BT):
            uids = np.unique(seg_flat[i, :, 3])        # torch.unique equivalent (host glue)
            k = uids.shape[0]
            assert k <= K_PAD
            ids_pad[i, :k, 0] = uids.astype(np.float32)
            gt_num = int(np.sum(lab_flat[i, :, -1] > 0))
            num = max(gt_num, k)
            assert num <= N_PAD
            nums[i] = num

    # ---- fused bbox + cdist for ALL B*T timesteps: one pallas_call ----
    out_dev = _bbox_cdist_pallas(jnp.asarray(pts_pad),
                                 jnp.asarray(ids_pad),
                                 jnp.asarray(gt_pad))
    out_host = np.asarray(jax.block_until_ready(out_dev)).reshape(BT_PAD, OUT_ROWS, K_PAD)
    boxes = out_host[:BT, :8, :]        # (BT, 8, K_PAD): rows cx,cy,cz,dx,dy,dz,0,0
    costs = out_host[:BT, 8:, :]        # (BT, N_PAD, K_PAD): squared dist [gt, pred]

    # ---- host: Hungarian matching + gather matched boxes (packed into ONE array) ----
    T_PAD8 = max(8, ((T + 7) // 8) * 8)
    packed = np.zeros((B, 3, T_PAD8, L1_W), np.float32)   # rows: gt, pred, mask
    for i in range(BT):
        num = int(nums[i])
        if num == 0:
            continue
        b, t = divmod(i, T)
        # device cost is [gt, pred]; reference cdist(pred, gt) -> transpose the slice.
        distances = costs[i, :num, :num].T               # (num pred, num gt), squared
        ids_t, ids_t_one = linear_sum_assignment_host(distances)
        pred_box = boxes[i].T[:num, :7]                   # rows = instances (sorted id order)
        gt_box = lab_flat[i, :num, :7]
        gtm = np.zeros((N_PAD, BOX_PAD), np.float32)
        prm = np.zeros((N_PAD, BOX_PAD), np.float32)
        msk = np.zeros((N_PAD, BOX_PAD), np.float32)
        gtm[:num, :7] = gt_box[ids_t_one]
        prm[:num, :7] = pred_box[ids_t]
        msk[:num, :7] = 1.0
        packed[b, 0, t] = gtm.reshape(-1)
        packed[b, 1, t] = prm.reshape(-1)
        packed[b, 2, t] = msk.reshape(-1)

    # ---- single L1 kernel over the whole batch, per-b summed masked means ----
    losses_dev = _l1_pallas(jnp.asarray(packed))
    losses = np.asarray(jax.block_until_ready(losses_dev))[:, 0, 0]
    return losses.astype(np.float32)                      # (B,)


# ----------------------------------------------------------------------------
# Demo
# ----------------------------------------------------------------------------
if __name__ == "__main__":
    B, T, P, NLAB = 2, 8, 64, 16   # batch, timesteps, points per frame, max gt labels
    key = jax.random.PRNGKey(0)
    k_xyz, k_id, k_box = jax.random.split(key, 3)

    # predicted consistent instance segmentation: (B, T, P, 4) = x, y, z, instance_id
    xyz = jax.random.uniform(k_xyz, (B, T, P, 3), minval=-10.0, maxval=10.0)
    inst_id = jax.random.randint(k_id, (B, T, P, 1), minval=1, maxval=4).astype(jnp.float32)
    consistent_instance_seg = jnp.concatenate([xyz, inst_id], axis=-1)

    # gt instance labels: (B, T, NLAB, 8) = 7 box params + validity/id flag (last col > 0)
    gt_num = 3
    box_params = jax.random.uniform(k_box, (B, T, NLAB, 7), minval=-10.0, maxval=10.0)
    valid = jnp.zeros((B, T, NLAB, 1)).at[:, :, :gt_num, 0].set(
        jnp.arange(1, gt_num + 1, dtype=jnp.float32))
    instance_labels = jnp.concatenate([box_params, valid], axis=-1)
    instance_labels = instance_labels * (valid > 0)   # rows past gt_num are all-zero

    output = {'consistent_instance_seg': consistent_instance_seg}

    losses = loss_instance_box_forward_batch(output, instance_labels)   # (B,)
    total = float(np.sum(losses))

    assert losses.shape == (B,) and np.all(np.isfinite(losses)) and np.isfinite(total)
    print("KERNEL_OK")
</pallas_src>

<mosaic_0001>
module attributes {stable_mosaic.version = 11 : i64} {
  func.func @_bbox_cdist_kernel(%arg0: i32, %arg1: memref<8x8x128xf32, #tpu.memory_space<vmem>>, %arg2: memref<8x16x1xf32, #tpu.memory_space<vmem>>, %arg3: memref<8x16x8xf32, #tpu.memory_space<vmem>>, %arg4: memref<8x384xf32, #tpu.memory_space<vmem>>) attributes {dimension_semantics = [#tpu.dimension_semantics<parallel>], iteration_bounds = array<i64: 2>, scalar_prefetch = 0 : i64, scratch_operands = 0 : i64, tpu.core_type = #tpu.core_type<tc>, window_params = [{transform_indices = @transform_0, window_bounds = array<i64: 8, 8, 128>}, {transform_indices = @transform_1, window_bounds = array<i64: 8, 16, 1>}, {transform_indices = @transform_2, window_bounds = array<i64: 8, 16, 8>}, {transform_indices = @transform_3, window_bounds = array<i64: 8, 384>}]} {
    %c0 = arith.constant 0 : index
    %c0_0 = arith.constant 0 : index
    %c0_1 = arith.constant 0 : index
    %0 = vector.load %arg1[%c0, %c0_0, %c0_1] : memref<8x8x128xf32, #tpu.memory_space<vmem>>, vector<8x8x128xf32>
    %c0_2 = arith.constant 0 : index
    %c0_3 = arith.constant 0 : index
    %c0_4 = arith.constant 0 : index
    %1 = vector.load %arg2[%c0_2, %c0_3, %c0_4] : memref<8x16x1xf32, #tpu.memory_space<vmem>>, vector<8x16x1xf32>
    %c0_5 = arith.constant 0 : index
    %c0_6 = arith.constant 0 : index
    %c0_7 = arith.constant 0 : index
    %2 = vector.load %arg3[%c0_5, %c0_6, %c0_7] : memref<8x16x8xf32, #tpu.memory_space<vmem>>, vector<8x16x8xf32>
    %3 = vector.extract_strided_slice %0 {offsets = [0, 3, 0], sizes = [8, 1, 128], strides = [1, 1, 1]} : vector<8x8x128xf32> to vector<8x1x128xf32>
    %4 = vector.broadcast %3 : vector<8x1x128xf32> to vector<8x16x128xf32>
    %5 = vector.broadcast %1 : vector<8x16x1xf32> to vector<8x16x128xf32>
    %6 = arith.cmpf oeq, %4, %5 : vector<8x16x128xf32>
    %7 = vector.extract_strided_slice %0 {offsets = [0, 0, 0], sizes = [8, 1, 128], strides = [1, 1, 1]} : vector<8x8x128xf32> to vector<8x1x128xf32>
    %cst = arith.constant 1.000000e+30 : f32
    %8 = vector.shape_cast %7 : vector<8x1x128xf32> to vector<8x1x128xf32>
    %9 = vector.broadcast %8 : vector<8x1x128xf32> to vector<8x16x128xf32>
    %10 = vector.broadcast %cst : f32 to vector<8x16x128xf32>
    %11 = arith.select %6, %9, %10 : vector<8x16x128xi1>, vector<8x16x128xf32>
    %cst_8 = arith.constant dense<0x7F800000> : vector<8x16xf32>
    %12 = vector.multi_reduction <minimumf>, %11, %cst_8 [2] : vector<8x16x128xf32> to vector<8x16xf32>
    %cst_9 = arith.constant -1.000000e+30 : f32
    %13 = vector.shape_cast %7 : vector<8x1x128xf32> to vector<8x1x128xf32>
    %14 = vector.broadcast %13 : vector<8x1x128xf32> to vector<8x16x128xf32>
    %15 = vector.broadcast %cst_9 : f32 to vector<8x16x128xf32>
    %16 = arith.select %6, %14, %15 : vector<8x16x128xi1>, vector<8x16x128xf32>
    %cst_10 = arith.constant dense<0xFF800000> : vector<8x16xf32>
    %17 = vector.multi_reduction <maximumf>, %16, %cst_10 [2] : vector<8x16x128xf32> to vector<8x16xf32>
    %18 = vector.extract_strided_slice %0 {offsets = [0, 1, 0], sizes = [8, 1, 128], strides = [1, 1, 1]} : vector<8x8x128xf32> to vector<8x1x128xf32>
    %cst_11 = arith.constant 1.000000e+30 : f32
    %19 = vector.shape_cast %18 : vector<8x1x128xf32> to vector<8x1x128xf32>
    %20 = vector.broadcast %19 : vector<8x1x128xf32> to vector<8x16x128xf32>
    %21 = vector.broadcast %cst_11 : f32 to vector<8x16x128xf32>
    %22 = arith.select %6, %20, %21 : vector<8x16x128xi1>, vector<8x16x128xf32>
    %cst_12 = arith.constant dense<0x7F800000> : vector<8x16xf32>
    %23 = vector.multi_reduction <minimumf>, %22, %cst_12 [2] : vector<8x16x128xf32> to vector<8x16xf32>
    %cst_13 = arith.constant -1.000000e+30 : f32
    %24 = vector.shape_cast %18 : vector<8x1x128xf32> to vector<8x1x128xf32>
    %25 = vector.broadcast %24 : vector<8x1x128xf32> to vector<8x16x128xf32>
    %26 = vector.broadcast %cst_13 : f32 to vector<8x16x128xf32>
    %27 = arith.select %6, %25, %26 : vector<8x16x128xi1>, vector<8x16x128xf32>
    %cst_14 = arith.constant dense<0xFF800000> : vector<8x16xf32>
    %28 = vector.multi_reduction <maximumf>, %27, %cst_14 [2] : vector<8x16x128xf32> to vector<8x16xf32>
    %29 = vector.extract_strided_slice %0 {offsets = [0, 2, 0], sizes = [8, 1, 128], strides = [1, 1, 1]} : vector<8x8x128xf32> to vector<8x1x128xf32>
    %cst_15 = arith.constant 1.000000e+30 : f32
    %30 = vector.shape_cast %29 : vector<8x1x128xf32> to vector<8x1x128xf32>
    %31 = vector.broadcast %30 : vector<8x1x128xf32> to vector<8x16x128xf32>
    %32 = vector.broadcast %cst_15 : f32 to vector<8x16x128xf32>
    %33 = arith.select %6, %31, %32 : vector<8x16x128xi1>, vector<8x16x128xf32>
    %cst_16 = arith.constant dense<0x7F800000> : vector<8x16xf32>
    %34 = vector.multi_reduction <minimumf>, %33, %cst_16 [2] : vector<8x16x128xf32> to vector<8x16xf32>
    %cst_17 = arith.constant -1.000000e+30 : f32
    %35 = vector.shape_cast %29 : vector<8x1x128xf32> to vector<8x1x128xf32>
    %36 = vector.broadcast %35 : vector<8x1x128xf32> to vector<8x16x128xf32>
    %37 = vector.broadcast %cst_17 : f32 to vector<8x16x128xf32>
    %38 = arith.select %6, %36, %37 : vector<8x16x128xi1>, vector<8x16x128xf32>
    %cst_18 = arith.constant dense<0xFF800000> : vector<8x16xf32>
    %39 = vector.multi_reduction <maximumf>, %38, %cst_18 [2] : vector<8x16x128xf32> to vector<8x16xf32>
    %40 = arith.addf %12, %17 : vector<8x16xf32>
    %cst_19 = arith.constant 5.000000e-01 : f32
    %41 = vector.broadcast %cst_19 : f32 to vector<8x16xf32>
    %42 = arith.mulf %40, %41 : vector<8x16xf32>
    %43 = arith.addf %23, %28 : vector<8x16xf32>
    %cst_20 = arith.constant 5.000000e-01 : f32
    %44 = vector.broadcast %cst_20 : f32 to vector<8x16xf32>
    %45 = arith.mulf %43, %44 : vector<8x16xf32>
    %46 = arith.addf %34, %39 : vector<8x16xf32>
    %cst_21 = arith.constant 5.000000e-01 : f32
    %47 = vector.broadcast %cst_21 : f32 to vector<8x16xf32>
    %48 = arith.mulf %46, %47 : vector<8x16xf32>
    %49 = arith.subf %17, %12 : vector<8x16xf32>
    %cst_22 = arith.constant 0.000000e+00 : f32
    %50 = vector.broadcast %cst_22 : f32 to vector<8x16xf32>
    %51 = arith.maximumf %49, %50 : vector<8x16xf32>
    %52 = arith.subf %28, %23 : vector<8x16xf32>
    %cst_23 = arith.constant 0.000000e+00 : f32
    %53 = vector.broadcast %cst_23 : f32 to vector<8x16xf32>
    %54 = arith.maximumf %52, %53 : vector<8x16xf32>
    %55 = arith.subf %39, %34 : vector<8x16xf32>
    %cst_24 = arith.constant 0.000000e+00 : f32
    %56 = vector.broadcast %cst_24 : f32 to vector<8x16xf32>
    %57 = arith.maximumf %55, %56 : vector<8x16xf32>
    %cst_25 = arith.constant 0.000000e+00 : f32
    %58 = vector.broadcast %cst_25 : f32 to vector<8x16xf32>
    %cst_26 = arith.constant 0.000000e+00 : f32
    %59 = vector.broadcast %cst_26 : f32 to vector<8x16xf32>
    %60 = vector.extract_strided_slice %2 {offsets = [0, 0, 0], sizes = [8, 1, 1], strides = [1, 1, 1]} : vector<8x16x8xf32> to vector<8x1x1xf32>
    %61 = vector.shape_cast %60 : vector<8x1x1xf32> to vector<8x1xf32>
    %62 = vector.broadcast %61 : vector<8x1xf32> to vector<8x16xf32>
    %63 = arith.subf %62, %42 : vector<8x16xf32>
    %64 = arith.mulf %63, %63 : vector<8x16xf32>
    %65 = arith.addf %59, %64 : vector<8x16xf32>
    %66 = vector.extract_strided_slice %2 {offsets = [0, 0, 1], sizes = [8, 1, 1], strides = [1, 1, 1]} : vector<8x16x8xf32> to vector<8x1x1xf32>
    %67 = vector.shape_cast %66 : vector<8x1x1xf32> to vector<8x1xf32>
    %68 = vector.broadcast %67 : vector<8x1xf32> to vector<8x16xf32>
    %69 = arith.subf %68, %45 : vector<8x16xf32>
    %70 = arith.mulf %69, %69 : vector<8x16xf32>
    %71 = arith.addf %65, %70 : vector<8x16xf32>
    %72 = vector.extract_strided_slice %2 {offsets = [0, 0, 2], sizes = [8, 1, 1], strides = [1, 1, 1]} : vector<8x16x8xf32> to vector<8x1x1xf32>
    %73 = vector.shape_cast %72 : vector<8x1x1xf32> to vector<8x1xf32>
    %74 = vector.broadcast %73 : vector<8x1xf32> to vector<8x16xf32>
    %75 = arith.subf %74, %48 : vector<8x16xf32>
    %76 = arith.mulf %75, %75 : vector<8x16xf32>
    %77 = arith.addf %71, %76 : vector<8x16xf32>
    %cst_27 = arith.constant 0.000000e+00 : f32
    %78 = vector.broadcast %cst_27 : f32 to vector<8x16xf32>
    %79 = vector.extract_strided_slice %2 {offsets = [0, 1, 0], sizes = [8, 1, 1], strides = [1, 1, 1]} : vector<8x16x8xf32> to vector<8x1x1xf32>
    %80 = vector.shape_cast %79 : vector<8x1x1xf32> to vector<8x1xf32>
    %81 = vector.broadcast %80 : vector<8x1xf32> to vector<8x16xf32>
    %82 = arith.subf %81, %42 : vector<8x16xf32>
    %83 = arith.mulf %82, %82 : vector<8x16xf32>
    %84 = arith.addf %78, %83 : vector<8x16xf32>
    %85 = vector.extract_strided_slice %2 {offsets = [0, 1, 1], sizes = [8, 1, 1], strides = [1, 1, 1]} : vector<8x16x8xf32> to vector<8x1x1xf32>
    %86 = vector.shape_cast %85 : vector<8x1x1xf32> to vector<8x1xf32>
    %87 = vector.broadcast %86 : vector<8x1xf32> to vector<8x16xf32>
    %88 = arith.subf %87, %45 : vector<8x16xf32>
    %89 = arith.mulf %88, %88 : vector<8x16xf32>
    %90 = arith.addf %84, %89 : vector<8x16xf32>
    %91 = vector.extract_strided_slice %2 {offsets = [0, 1, 2], sizes = [8, 1, 1], strides = [1, 1, 1]} : vector<8x16x8xf32> to vector<8x1x1xf32>
    %92 = vector.shape_cast %91 : vector<8x1x1xf32> to vector<8x1xf32>
    %93 = vector.broadcast %92 : vector<8x1xf32> to vector<8x16xf32>
    %94 = arith.subf %93, %48 : vector<8x16xf32>
    %95 = arith.mulf %94, %94 : vector<8x16xf32>
    %96 = arith.addf %90, %95 : vector<8x16xf32>
    %cst_28 = arith.constant 0.000000e+00 : f32
    %97 = vector.broadcast %cst_28 : f32 to vector<8x16xf32>
    %98 = vector.extract_strided_slice %2 {offsets = [0, 2, 0], sizes = [8, 1, 1], strides = [1, 1, 1]} : vector<8x16x8xf32> to vector<8x1x1xf32>
    %99 = vector.shape_cast %98 : vector<8x1x1xf32> to vector<8x1xf32>
    %100 = vector.broadcast %99 : vector<8x1xf32> to vector<8x16xf32>
    %101 = arith.subf %100, %42 : vector<8x16xf32>
    %102 = arith.mulf %101, %101 : vector<8x16xf32>
    %103 = arith.addf %97, %102 : vector<8x16xf32>
    %104 = vector.extract_strided_slice %2 {offsets = [0, 2, 1], sizes = [8, 1, 1], strides = [1, 1, 1]} : vector<8x16x8xf32> to vector<8x1x1xf32>
    %105 = vector.shape_cast %104 : vector<8x1x1xf32> to vector<8x1xf32>
    %106 = vector.broadcast %105 : vector<8x1xf32> to vector<8x16xf32>
    %107 = arith.subf %106, %45 : vector<8x16xf32>
    %108 = arith.mulf %107, %107 : vector<8x16xf32>
    %109 = arith.addf %103, %108 : vector<8x16xf32>
    %110 = vector.extract_strided_slice %2 {offsets = [0, 2, 2], sizes = [8, 1, 1], strides = [1, 1, 1]} : vector<8x16x8xf32> to vector<8x1x1xf32>
    %111 = vector.shape_cast %110 : vector<8x1x1xf32> to vector<8x1xf32>
    %112 = vector.broadcast %111 : vector<8x1xf32> to vector<8x16xf32>
    %113 = arith.subf %112, %48 : vector<8x16xf32>
    %114 = arith.mulf %113, %113 : vector<8x16xf32>
    %115 = arith.addf %109, %114 : vector<8x16xf32>
    %cst_29 = arith.constant 0.000000e+00 : f32
    %116 = vector.broadcast %cst_29 : f32 to vector<8x16xf32>
    %117 = vector.extract_strided_slice %2 {offsets = [0, 3, 0], sizes = [8, 1, 1], strides = [1, 1, 1]} : vector<8x16x8xf32> to vector<8x1x1xf32>
    %118 = vector.shape_cast %117 : vector<8x1x1xf32> to vector<8x1xf32>
    %119 = vector.broadcast %118 : vector<8x1xf32> to vector<8x16xf32>
    %120 = arith.subf %119, %42 : vector<8x16xf32>
    %121 = arith.mulf %120, %120 : vector<8x16xf32>
    %122 = arith.addf %116, %121 : vector<8x16xf32>
    %123 = vector.extract_strided_slice %2 {offsets = [0, 3, 1], sizes = [8, 1, 1], strides = [1, 1, 1]} : vector<8x16x8xf32> to vector<8x1x1xf32>
    %124 = vector.shape_cast %123 : vector<8x1x1xf32> to vector<8x1xf32>
    %125 = vector.broadcast %124 : vector<8x1xf32> to vector<8x16xf32>
    %126 = arith.subf %125, %45 : vector<8x16xf32>
    %127 = arith.mulf %126, %126 : vector<8x16xf32>
    %128 = arith.addf %122, %127 : vector<8x16xf32>
    %129 = vector.extract_strided_slice %2 {offsets = [0, 3, 2], sizes = [8, 1, 1], strides = [1, 1, 1]} : vector<8x16x8xf32> to vector<8x1x1xf32>
    %130 = vector.shape_cast %129 : vector<8x1x1xf32> to vector<8x1xf32>
    %131 = vector.broadcast %130 : vector<8x1xf32> to vector<8x16xf32>
    %132 = arith.subf %131, %48 : vector<8x16xf32>
    %133 = arith.mulf %132, %132 : vector<8x16xf32>
    %134 = arith.addf %128, %133 : vector<8x16xf32>
    %cst_30 = arith.constant 0.000000e+00 : f32
    %135 = vector.broadcast %cst_30 : f32 to vector<8x16xf32>
    %136 = vector.extract_strided_slice %2 {offsets = [0, 4, 0], sizes = [8, 1, 1], strides = [1, 1, 1]} : vector<8x16x8xf32> to vector<8x1x1xf32>
    %137 = vector.shape_cast %136 : vector<8x1x1xf32> to vector<8x1xf32>
    %138 = vector.broadcast %137 : vector<8x1xf32> to vector<8x16xf32>
    %139 = arith.subf %138, %42 : vector<8x16xf32>
    %140 = arith.mulf %139, %139 : vector<8x16xf32>
    %141 = arith.addf %135, %140 : vector<8x16xf32>
    %142 = vector.extract_strided_slice %2 {offsets = [0, 4, 1], sizes = [8, 1, 1], strides = [1, 1, 1]} : vector<8x16x8xf32> to vector<8x1x1xf32>
    %143 = vector.shape_cast %142 : vector<8x1x1xf32> to vector<8x1xf32>
    %144 = vector.broadcast %143 : vector<8x1xf32> to vector<8x16xf32>
    %145 = arith.subf %144, %45 : vector<8x16xf32>
    %146 = arith.mulf %145, %145 : vector<8x16xf32>
    %147 = arith.addf %141, %146 : vector<8x16xf32>
    %148 = vector.extract_strided_slice %2 {offsets = [0, 4, 2], sizes = [8, 1, 1], strides = [1, 1, 1]} : vector<8x16x8xf32> to vector<8x1x1xf32>
    %149 = vector.shape_cast %148 : vector<8x1x1xf32> to vector<8x1xf32>
    %150 = vector.broadcast %149 : vector<8x1xf32> to vector<8x16xf32>
    %151 = arith.subf %150, %48 : vector<8x16xf32>
    %152 = arith.mulf %151, %151 : vector<8x16xf32>
    %153 = arith.addf %147, %152 : vector<8x16xf32>
    %cst_31 = arith.constant 0.000000e+00 : f32
    %154 = vector.broadcast %cst_31 : f32 to vector<8x16xf32>
    %155 = vector.extract_strided_slice %2 {offsets = [0, 5, 0], sizes = [8, 1, 1], strides = [1, 1, 1]} : vector<8x16x8xf32> to vector<8x1x1xf32>
    %156 = vector.shape_cast %155 : vector<8x1x1xf32> to vector<8x1xf32>
    %157 = vector.broadcast %156 : vector<8x1xf32> to vector<8x16xf32>
    %158 = arith.subf %157, %42 : vector<8x16xf32>
    %159 = arith.mulf %158, %158 : vector<8x16xf32>
    %160 = arith.addf %154, %159 : vector<8x16xf32>
    %161 = vector.extract_strided_slice %2 {offsets = [0, 5, 1], sizes = [8, 1, 1], strides = [1, 1, 1]} : vector<8x16x8xf32> to vector<8x1x1xf32>
    %162 = vector.shape_cast %161 : vector<8x1x1xf32> to vector<8x1xf32>
    %163 = vector.broadcast %162 : vector<8x1xf32> to vector<8x16xf32>
    %164 = arith.subf %163, %45 : vector<8x16xf32>
    %165 = arith.mulf %164, %164 : vector<8x16xf32>
    %166 = arith.addf %160, %165 : vector<8x16xf32>
    %167 = vector.extract_strided_slice %2 {offsets = [0, 5, 2], sizes = [8, 1, 1], strides = [1, 1, 1]} : vector<8x16x8xf32> to vector<8x1x1xf32>
    %168 = vector.shape_cast %167 : vector<8x1x1xf32> to vector<8x1xf32>
    %169 = vector.broadcast %168 : vector<8x1xf32> to vector<8x16xf32>
    %170 = arith.subf %169, %48 : vector<8x16xf32>
    %171 = arith.mulf %170, %170 : vector<8x16xf32>
    %172 = arith.addf %166, %171 : vector<8x16xf32>
    %cst_32 = arith.constant 0.000000e+00 : f32
    %173 = vector.broadcast %cst_32 : f32 to vector<8x16xf32>
    %174 = vector.extract_strided_slice %2 {offsets = [0, 6, 0], sizes = [8, 1, 1], strides = [1, 1, 1]} : vector<8x16x8xf32> to vector<8x1x1xf32>
    %175 = vector.shape_cast %174 : vector<8x1x1xf32> to vector<8x1xf32>
    %176 = vector.broadcast %175 : vector<8x1xf32> to vector<8x16xf32>
    %177 = arith.subf %176, %42 : vector<8x16xf32>
    %178 = arith.mulf %177, %177 : vector<8x16xf32>
    %179 = arith.addf %173, %178 : vector<8x16xf32>
    %180 = vector.extract_strided_slice %2 {offsets = [0, 6, 1], sizes = [8, 1, 1], strides = [1, 1, 1]} : vector<8x16x8xf32> to vector<8x1x1xf32>
    %181 = vector.shape_cast %180 : vector<8x1x1xf32> to vector<8x1xf32>
    %182 = vector.broadcast %181 : vector<8x1xf32> to vector<8x16xf32>
    %183 = arith.subf %182, %45 : vector<8x16xf32>
    %184 = arith.mulf %183, %183 : vector<8x16xf32>
    %185 = arith.addf %179, %184 : vector<8x16xf32>
    %186 = vector.extract_strided_slice %2 {offsets = [0, 6, 2], sizes = [8, 1, 1], strides = [1, 1, 1]} : vector<8x16x8xf32> to vector<8x1x1xf32>
    %187 = vector.shape_cast %186 : vector<8x1x1xf32> to vector<8x1xf32>
    %188 = vector.broadcast %187 : vector<8x1xf32> to vector<8x16xf32>
    %189 = arith.subf %188, %48 : vector<8x16xf32>
    %190 = arith.mulf %189, %189 : vector<8x16xf32>
    %191 = arith.addf %185, %190 : vector<8x16xf32>
    %cst_33 = arith.constant 0.000000e+00 : f32
    %192 = vector.broadcast %cst_33 : f32 to vector<8x16xf32>
    %193 = vector.extract_strided_slice %2 {offsets = [0, 7, 0], sizes = [8, 1, 1], strides = [1, 1, 1]} : vector<8x16x8xf32> to vector<8x1x1xf32>
    %194 = vector.shape_cast %193 : vector<8x1x1xf32> to vector<8x1xf32>
    %195 = vector.broadcast %194 : vector<8x1xf32> to vector<8x16xf32>
    %196 = arith.subf %195, %42 : vector<8x16xf32>
    %197 = arith.mulf %196, %196 : vector<8x16xf32>
    %198 = arith.addf %192, %197 : vector<8x16xf32>
    %199 = vector.extract_strided_slice %2 {offsets = [0, 7, 1], sizes = [8, 1, 1], strides = [1, 1, 1]} : vector<8x16x8xf32> to vector<8x1x1xf32>
    %200 = vector.shape_cast %199 : vector<8x1x1xf32> to vector<8x1xf32>
    %201 = vector.broadcast %200 : vector<8x1xf32> to vector<8x16xf32>
    %202 = arith.subf %201, %45 : vector<8x16xf32>
    %203 = arith.mulf %202, %202 : vector<8x16xf32>
    %204 = arith.addf %198, %203 : vector<8x16xf32>
    %205 = vector.extract_strided_slice %2 {offsets = [0, 7, 2], sizes = [8, 1, 1], strides = [1, 1, 1]} : vector<8x16x8xf32> to vector<8x1x1xf32>
    %206 = vector.shape_cast %205 : vector<8x1x1xf32> to vector<8x1xf32>
    %207 = vector.broadcast %206 : vector<8x1xf32> to vector<8x16xf32>
    %208 = arith.subf %207, %48 : vector<8x16xf32>
    %209 = arith.mulf %208, %208 : vector<8x16xf32>
    %210 = arith.addf %204, %209 : vector<8x16xf32>
    %cst_34 = arith.constant 0.000000e+00 : f32
    %211 = vector.broadcast %cst_34 : f32 to vector<8x16xf32>
    %212 = vector.extract_strided_slice %2 {offsets = [0, 8, 0], sizes = [8, 1, 1], strides = [1, 1, 1]} : vector<8x16x8xf32> to vector<8x1x1xf32>
    %213 = vector.shape_cast %212 : vector<8x1x1xf32> to vector<8x1xf32>
    %214 = vector.broadcast %213 : vector<8x1xf32> to vector<8x16xf32>
    %215 = arith.subf %214, %42 : vector<8x16xf32>
    %216 = arith.mulf %215, %215 : vector<8x16xf32>
    %217 = arith.addf %211, %216 : vector<8x16xf32>
    %218 = vector.extract_strided_slice %2 {offsets = [0, 8, 1], sizes = [8, 1, 1], strides = [1, 1, 1]} : vector<8x16x8xf32> to vector<8x1x1xf32>
    %219 = vector.shape_cast %218 : vector<8x1x1xf32> to vector<8x1xf32>
    %220 = vector.broadcast %219 : vector<8x1xf32> to vector<8x16xf32>
    %221 = arith.subf %220, %45 : vector<8x16xf32>
    %222 = arith.mulf %221, %221 : vector<8x16xf32>
    %223 = arith.addf %217, %222 : vector<8x16xf32>
    %224 = vector.extract_strided_slice %2 {offsets = [0, 8, 2], sizes = [8, 1, 1], strides = [1, 1, 1]} : vector<8x16x8xf32> to vector<8x1x1xf32>
    %225 = vector.shape_cast %224 : vector<8x1x1xf32> to vector<8x1xf32>
    %226 = vector.broadcast %225 : vector<8x1xf32> to vector<8x16xf32>
    %227 = arith.subf %226, %48 : vector<8x16xf32>
    %228 = arith.mulf %227, %227 : vector<8x16xf32>
    %229 = arith.addf %223, %228 : vector<8x16xf32>
    %cst_35 = arith.constant 0.000000e+00 : f32
    %230 = vector.broadcast %cst_35 : f32 to vector<8x16xf32>
    %231 = vector.extract_strided_slice %2 {offsets = [0, 9, 0], sizes = [8, 1, 1], strides = [1, 1, 1]} : vector<8x16x8xf32> to vector<8x1x1xf32>
    %232 = vector.shape_cast %231 : vector<8x1x1xf32> to vector<8x1xf32>
    %233 = vector.broadcast %232 : vector<8x1xf32> to vector<8x16xf32>
    %234 = arith.subf %233, %42 : vector<8x16xf32>
    %235 = arith.mulf %234, %234 : vector<8x16xf32>
    %236 = arith.addf %230, %235 : vector<8x16xf32>
    %237 = vector.extract_strided_slice %2 {offsets = [0, 9, 1], sizes = [8, 1, 1], strides = [1, 1, 1]} : vector<8x16x8xf32> to vector<8x1x1xf32>
    %238 = vector.shape_cast %237 : vector<8x1x1xf32> to vector<8x1xf32>
    %239 = vector.broadcast %238 : vector<8x1xf32> to vector<8x16xf32>
    %240 = arith.subf %239, %45 : vector<8x16xf32>
    %241 = arith.mulf %240, %240 : vector<8x16xf32>
    %242 = arith.addf %236, %241 : vector<8x16xf32>
    %243 = vector.extract_strided_slice %2 {offsets = [0, 9, 2], sizes = [8, 1, 1], strides = [1, 1, 1]} : vector<8x16x8xf32> to vector<8x1x1xf32>
    %244 = vector.shape_cast %243 : vector<8x1x1xf32> to vector<8x1xf32>
    %245 = vector.broadcast %244 : vector<8x1xf32> to vector<8x16xf32>
    %246 = arith.subf %245, %48 : vector<8x16xf32>
    %247 = arith.mulf %246, %246 : vector<8x16xf32>
    %248 = arith.addf %242, %247 : vector<8x16xf32>
    %cst_36 = arith.constant 0.000000e+00 : f32
    %249 = vector.broadcast %cst_36 : f32 to vector<8x16xf32>
    %250 = vector.extract_strided_slice %2 {offsets = [0, 10, 0], sizes = [8, 1, 1], strides = [1, 1, 1]} : vector<8x16x8xf32> to vector<8x1x1xf32>
    %251 = vector.shape_cast %250 : vector<8x1x1xf32> to vector<8x1xf32>
    %252 = vector.broadcast %251 : vector<8x1xf32> to vector<8x16xf32>
    %253 = arith.subf %252, %42 : vector<8x16xf32>
    %254 = arith.mulf %253, %253 : vector<8x16xf32>
    %255 = arith.addf %249, %254 : vector<8x16xf32>
    %256 = vector.extract_strided_slice %2 {offsets = [0, 10, 1], sizes = [8, 1, 1], strides = [1, 1, 1]} : vector<8x16x8xf32> to vector<8x1x1xf32>
    %257 = vector.shape_cast %256 : vector<8x1x1xf32> to vector<8x1xf32>
    %258 = vector.broadcast %257 : vector<8x1xf32> to vector<8x16xf32>
    %259 = arith.subf %258, %45 : vector<8x16xf32>
    %260 = arith.mulf %259, %259 : vector<8x16xf32>
    %261 = arith.addf %255, %260 : vector<8x16xf32>
    %262 = vector.extract_strided_slice %2 {offsets = [0, 10, 2], sizes = [8, 1, 1], strides = [1, 1, 1]} : vector<8x16x8xf32> to vector<8x1x1xf32>
    %263 = vector.shape_cast %262 : vector<8x1x1xf32> to vector<8x1xf32>
    %264 = vector.broadcast %263 : vector<8x1xf32> to vector<8x16xf32>
    %265 = arith.subf %264, %48 : vector<8x16xf32>
    %266 = arith.mulf %265, %265 : vector<8x16xf32>
    %267 = arith.addf %261, %266 : vector<8x16xf32>
    %cst_37 = arith.constant 0.000000e+00 : f32
    %268 = vector.broadcast %cst_37 : f32 to vector<8x16xf32>
    %269 = vector.extract_strided_slice %2 {offsets = [0, 11, 0], sizes = [8, 1, 1], strides = [1, 1, 1]} : vector<8x16x8xf32> to vector<8x1x1xf32>
    %270 = vector.shape_cast %269 : vector<8x1x1xf32> to vector<8x1xf32>
    %271 = vector.broadcast %270 : vector<8x1xf32> to vector<8x16xf32>
    %272 = arith.subf %271, %42 : vector<8x16xf32>
    %273 = arith.mulf %272, %272 : vector<8x16xf32>
    %274 = arith.addf %268, %273 : vector<8x16xf32>
    %275 = vector.extract_strided_slice %2 {offsets = [0, 11, 1], sizes = [8, 1, 1], strides = [1, 1, 1]} : vector<8x16x8xf32> to vector<8x1x1xf32>
    %276 = vector.shape_cast %275 : vector<8x1x1xf32> to vector<8x1xf32>
    %277 = vector.broadcast %276 : vector<8x1xf32> to vector<8x16xf32>
    %278 = arith.subf %277, %45 : vector<8x16xf32>
    %279 = arith.mulf %278, %278 : vector<8x16xf32>
    %280 = arith.addf %274, %279 : vector<8x16xf32>
    %281 = vector.extract_strided_slice %2 {offsets = [0, 11, 2], sizes = [8, 1, 1], strides = [1, 1, 1]} : vector<8x16x8xf32> to vector<8x1x1xf32>
    %282 = vector.shape_cast %281 : vector<8x1x1xf32> to vector<8x1xf32>
    %283 = vector.broadcast %282 : vector<8x1xf32> to vector<8x16xf32>
    %284 = arith.subf %283, %48 : vector<8x16xf32>
    %285 = arith.mulf %284, %284 : vector<8x16xf32>
    %286 = arith.addf %280, %285 : vector<8x16xf32>
    %cst_38 = arith.constant 0.000000e+00 : f32
    %287 = vector.broadcast %cst_38 : f32 to vector<8x16xf32>
    %288 = vector.extract_strided_slice %2 {offsets = [0, 12, 0], sizes = [8, 1, 1], strides = [1, 1, 1]} : vector<8x16x8xf32> to vector<8x1x1xf32>
    %289 = vector.shape_cast %288 : vector<8x1x1xf32> to vector<8x1xf32>
    %290 = vector.broadcast %289 : vector<8x1xf32> to vector<8x16xf32>
    %291 = arith.subf %290, %42 : vector<8x16xf32>
    %292 = arith.mulf %291, %291 : vector<8x16xf32>
    %293 = arith.addf %287, %292 : vector<8x16xf32>
    %294 = vector.extract_strided_slice %2 {offsets = [0, 12, 1], sizes = [8, 1, 1], strides = [1, 1, 1]} : vector<8x16x8xf32> to vector<8x1x1xf32>
    %295 = vector.shape_cast %294 : vector<8x1x1xf32> to vector<8x1xf32>
    %296 = vector.broadcast %295 : vector<8x1xf32> to vector<8x16xf32>
    %297 = arith.subf %296, %45 : vector<8x16xf32>
    %298 = arith.mulf %297, %297 : vector<8x16xf32>
    %299 = arith.addf %293, %298 : vector<8x16xf32>
    %300 = vector.extract_strided_slice %2 {offsets = [0, 12, 2], sizes = [8, 1, 1], strides = [1, 1, 1]} : vector<8x16x8xf32> to vector<8x1x1xf32>
    %301 = vector.shape_cast %300 : vector<8x1x1xf32> to vector<8x1xf32>
    %302 = vector.broadcast %301 : vector<8x1xf32> to vector<8x16xf32>
    %303 = arith.subf %302, %48 : vector<8x16xf32>
    %304 = arith.mulf %303, %303 : vector<8x16xf32>
    %305 = arith.addf %299, %304 : vector<8x16xf32>
    %cst_39 = arith.constant 0.000000e+00 : f32
    %306 = vector.broadcast %cst_39 : f32 to vector<8x16xf32>
    %307 = vector.extract_strided_slice %2 {offsets = [0, 13, 0], sizes = [8, 1, 1], strides = [1, 1, 1]} : vector<8x16x8xf32> to vector<8x1x1xf32>
    %308 = vector.shape_cast %307 : vector<8x1x1xf32> to vector<8x1xf32>
    %309 = vector.broadcast %308 : vector<8x1xf32> to vector<8x16xf32>
    %310 = arith.subf %309, %42 : vector<8x16xf32>
    %311 = arith.mulf %310, %310 : vector<8x16xf32>
    %312 = arith.addf %306, %311 : vector<8x16xf32>
    %313 = vector.extract_strided_slice %2 {offsets = [0, 13, 1], sizes = [8, 1, 1], strides = [1, 1, 1]} : vector<8x16x8xf32> to vector<8x1x1xf32>
    %314 = vector.shape_cast %313 : vector<8x1x1xf32> to vector<8x1xf32>
    %315 = vector.broadcast %314 : vector<8x1xf32> to vector<8x16xf32>
    %316 = arith.subf %315, %45 : vector<8x16xf32>
    %317 = arith.mulf %316, %316 : vector<8x16xf32>
    %318 = arith.addf %312, %317 : vector<8x16xf32>
    %319 = vector.extract_strided_slice %2 {offsets = [0, 13, 2], sizes = [8, 1, 1], strides = [1, 1, 1]} : vector<8x16x8xf32> to vector<8x1x1xf32>
    %320 = vector.shape_cast %319 : vector<8x1x1xf32> to vector<8x1xf32>
    %321 = vector.broadcast %320 : vector<8x1xf32> to vector<8x16xf32>
    %322 = arith.subf %321, %48 : vector<8x16xf32>
    %323 = arith.mulf %322, %322 : vector<8x16xf32>
    %324 = arith.addf %318, %323 : vector<8x16xf32>
    %cst_40 = arith.constant 0.000000e+00 : f32
    %325 = vector.broadcast %cst_40 : f32 to vector<8x16xf32>
    %326 = vector.extract_strided_slice %2 {offsets = [0, 14, 0], sizes = [8, 1, 1], strides = [1, 1, 1]} : vector<8x16x8xf32> to vector<8x1x1xf32>
    %327 = vector.shape_cast %326 : vector<8x1x1xf32> to vector<8x1xf32>
    %328 = vector.broadcast %327 : vector<8x1xf32> to vector<8x16xf32>
    %329 = arith.subf %328, %42 : vector<8x16xf32>
    %330 = arith.mulf %329, %329 : vector<8x16xf32>
    %331 = arith.addf %325, %330 : vector<8x16xf32>
    %332 = vector.extract_strided_slice %2 {offsets = [0, 14, 1], sizes = [8, 1, 1], strides = [1, 1, 1]} : vector<8x16x8xf32> to vector<8x1x1xf32>
    %333 = vector.shape_cast %332 : vector<8x1x1xf32> to vector<8x1xf32>
    %334 = vector.broadcast %333 : vector<8x1xf32> to vector<8x16xf32>
    %335 = arith.subf %334, %45 : vector<8x16xf32>
    %336 = arith.mulf %335, %335 : vector<8x16xf32>
    %337 = arith.addf %331, %336 : vector<8x16xf32>
    %338 = vector.extract_strided_slice %2 {offsets = [0, 14, 2], sizes = [8, 1, 1], strides = [1, 1, 1]} : vector<8x16x8xf32> to vector<8x1x1xf32>
    %339 = vector.shape_cast %338 : vector<8x1x1xf32> to vector<8x1xf32>
    %340 = vector.broadcast %339 : vector<8x1xf32> to vector<8x16xf32>
    %341 = arith.subf %340, %48 : vector<8x16xf32>
    %342 = arith.mulf %341, %341 : vector<8x16xf32>
    %343 = arith.addf %337, %342 : vector<8x16xf32>
    %cst_41 = arith.constant 0.000000e+00 : f32
    %344 = vector.broadcast %cst_41 : f32 to vector<8x16xf32>
    %345 = vector.extract_strided_slice %2 {offsets = [0, 15, 0], sizes = [8, 1, 1], strides = [1, 1, 1]} : vector<8x16x8xf32> to vector<8x1x1xf32>
    %346 = vector.shape_cast %345 : vector<8x1x1xf32> to vector<8x1xf32>
    %347 = vector.broadcast %346 : vector<8x1xf32> to vector<8x16xf32>
    %348 = arith.subf %347, %42 : vector<8x16xf32>
    %349 = arith.mulf %348, %348 : vector<8x16xf32>
    %350 = arith.addf %344, %349 : vector<8x16xf32>
    %351 = vector.extract_strided_slice %2 {offsets = [0, 15, 1], sizes = [8, 1, 1], strides = [1, 1, 1]} : vector<8x16x8xf32> to vector<8x1x1xf32>
    %352 = vector.shape_cast %351 : vector<8x1x1xf32> to vector<8x1xf32>
    %353 = vector.broadcast %352 : vector<8x1xf32> to vector<8x16xf32>
    %354 = arith.subf %353, %45 : vector<8x16xf32>
    %355 = arith.mulf %354, %354 : vector<8x16xf32>
    %356 = arith.addf %350, %355 : vector<8x16xf32>
    %357 = vector.extract_strided_slice %2 {offsets = [0, 15, 2], sizes = [8, 1, 1], strides = [1, 1, 1]} : vector<8x16x8xf32> to vector<8x1x1xf32>
    %358 = vector.shape_cast %357 : vector<8x1x1xf32> to vector<8x1xf32>
    %359 = vector.broadcast %358 : vector<8x1xf32> to vector<8x16xf32>
    %360 = arith.subf %359, %48 : vector<8x16xf32>
    %361 = arith.mulf %360, %360 : vector<8x16xf32>
    %362 = arith.addf %356, %361 : vector<8x16xf32>
    %363 = tpu.concatenate %42, %45, %48, %51, %54, %57, %58, %58, %77, %96, %115, %134, %153, %172, %191, %210 in 1 : vector<8x16xf32>, vector<8x16xf32>, vector<8x16xf32>, vector<8x16xf32>, vector<8x16xf32>, vector<8x16xf32>, vector<8x16xf32>, vector<8x16xf32>, vector<8x16xf32>, vector<8x16xf32>, vector<8x16xf32>, vector<8x16xf32>, vector<8x16xf32>, vector<8x16xf32>, vector<8x16xf32>, vector<8x16xf32> -> vector<8x256xf32>
    %364 = tpu.concatenate %229, %248, %267, %286, %305, %324, %343, %362 in 1 : vector<8x16xf32>, vector<8x16xf32>, vector<8x16xf32>, vector<8x16xf32>, vector<8x16xf32>, vector<8x16xf32>, vector<8x16xf32>, vector<8x16xf32> -> vector<8x128xf32>
    %365 = tpu.concatenate %363, %364 in 1 : vector<8x256xf32>, vector<8x128xf32> -> vector<8x384xf32>
    %c0_42 = arith.constant 0 : index
    %c0_43 = arith.constant 0 : index
    %366 = vector.load %arg4[%c0_42, %c0_43] : memref<8x384xf32, #tpu.memory_space<vmem>>, vector<8x384xf32>
    tpu.vector_store %arg4[%c0_42, %c0_43], %365 {strides = array<i32>} : memref<8x384xf32, #tpu.memory_space<vmem>>, vector<8x384xf32>,
    return
  }
  func.func @transform_0(%arg0: i32) -> (i32, i32, i32) {
    %c0_i32 = arith.constant 0 : i32
    %c0_i32_0 = arith.constant 0 : i32
    %c0_i32_1 = arith.constant 0 : i32
    return %arg0, %c0_i32, %c0_i32_0 : i32, i32, i32
  }
  func.func @transform_1(%arg0: i32) -> (i32, i32, i32) {
    %c0_i32 = arith.constant 0 : i32
    %c0_i32_0 = arith.constant 0 : i32
    %c0_i32_1 = arith.constant 0 : i32
    return %arg0, %c0_i32, %c0_i32_0 : i32, i32, i32
  }
  func.func @transform_2(%arg0: i32) -> (i32, i32, i32) {
    %c0_i32 = arith.constant 0 : i32
    %c0_i32_0 = arith.constant 0 : i32
    %c0_i32_1 = arith.constant 0 : i32
    return %arg0, %c0_i32, %c0_i32_0 : i32, i32, i32
  }
  func.func @transform_3(%arg0: i32) -> (i32, i32) {
    %c0_i32 = arith.constant 0 : i32
    %c0_i32_0 = arith.constant 0 : i32
    return %arg0, %c0_i32 : i32, i32
  }
}

</mosaic_0001>

<bundles_post_ra>
// kernel: _bbox_cdist_pallas.1
= control target key start
LH: loop header
LB: loop body
LE: loop exit
PB: predicated region body
PF: predicated region fallthrough
CT: control target
= control target key end

     0   :  { %8 = vsyncpa [#allocation3], 0  ;;  %s4780_s0 = inlined_call_operand.vmem [shape: f32[16,8,128], index: 0, kind: input, shape index: {}]   ;;  %s4781_s1 = inlined_call_operand.vmem [shape: f32[16,16,1], index: 1, kind: input, shape index: {}]   ;;  %s4782_s2 = inlined_call_operand.vmem [shape: f32[16,16,8], index: 2, kind: input, shape index: {}]   ;;  %s4783_s3 = inlined_call_operand.hbm [shape: f32[16,384], index: 3, kind: output, shape index: {}]  }
   0x1   :  { %10 = vsyncpa [#allocation3 + $0x1], 0  ;;  %s2688_s12 = smov 0   ;;  %s2690_s13 = smov 0  }
   0x2   :  { %s2692_s14 = smov 0   ;;  %s2694_s15 = smov 0  }
   0x3 LB: > { %s2709_s16 = sadd.s32 4294967295, %s2655_s15   ;;  %s2500_s17 = sadd.s32 4294967294, %s2655_s15   ;;  %s2655_s15 = sphi %s2694_s15, %s5005_s15   ;;  %s2651_s14 = sphi %s2692_s14, %s5004_s14   ;;  %s2647_s13 = sphi %s2690_s13, %s5003_s13   ;;  %s2643_s12 = sphi %s2688_s12, %s5002_s12  }
   0x4   : > { %s2713_s18 = sadd.s32 1, %s2655_s15   ;;  %s101_s19 = sadd.s32 1, %s2651_s14 }
   0x5   : > { %s98_s20 = ssub.s32 %s2655_s15, %s2713_s18  ;;  %p111_p0 = scmp.ne.s32.totalorder %s2651_s14, %s2647_s13 }
   0x6   : > { %p99_p1 = scmp.eq.s32.totalorder %s98_s20, 0  ;;  %p112_p2 = scmp.eq.s32.totalorder %s2709_s16, 1 }
   0x7   : > { %p117_p3 = scmp.ne.s32.totalorder %s2647_s13, %s2643_s12  ;;  %p118_p4 = scmp.eq.s32.totalorder %s2500_s17, 1 }
   0x8   : > { %s2724_s21 = scalar_select %p99_p1, %s2651_s14, %s101_s19  }
   0x9   : > { %p2726_p5 = por %p112_p2, %p111_p0  ;;  %p2730_p6 = por %p118_p4, %p117_p3 }
   0xa   : > { %p2503_p7 = scmp.ge.s32.totalorder %s2655_s15, 1  ;;  %p165_p8 = scmp.lt.s32.totalorder %s2655_s15, 3 }
   0xc   : > { %p166_p9 = pnand %p2503_p7, %p165_p8 }
   0xe   : > { %169 = sbr.rel (%p166_p9) target bundleno = 785 (0x311), region = 32 }
  0x15   : > { %s2504_s24 = sshll.u32 %s2709_s16, 3  ;;  %v4784_v0 = vmov 0   ;;  %v4786_v17 = vlaneseq  ;;  %s198_s9 = sand.u32 1, %s2647_s13  }
  0x16   : > { %2568 = vset.pattern.permute.xlu0 %v4784_v0  ;;  %p202_p10 = scmp.lt.s32.totalorder %s2504_s24, 15  ;;  %2569 = vset.pattern.permute.xlu1 %v4784_v0  ;;  %s2517_s10 = smul.u32 24, %s198_s9 }
  0x17   : > { %v2749_v18 = vshrl.u32 %v4786_v17, 7  ;;  %s2660_s17 = smov 16   ;;  %s2661_s19 = smov 32  }
  0x18   : > { %s5007_s24 = smov (!%p202_p10, %s2504_s24), 15  ;;  %s4326_s11 = scalar_lea.vmem [#allocation2], %s2517_s10 }
  0x19   : > { %s2515_s25 = sshll.u32 %s5007_s24, 4  ;;  %s2505_s29 = sshll.u32 %s5007_s24, 3  ;;  %4837 = vst [vmem:[#allocation5_spill] sm:$0xff] %v2749_v18  ;;  %v2757_v19 = vsub.s32 3, %v2749_v18  ;;  %v2761_v21 = vsub.s32 0, %v2749_v18  ;;  %v2765_v23 = vsub.s32 1, %v2749_v18 }
  0x1a   : > { %s212_s28 = scalar_lea.vmem %s4781_s1, %s2515_s25  ;;  %s2754_s5 = scalar_lea.vmem %s4780_s0, %s2505_s29  ;;  %v2768_v24 = vsub.s32 2, %v2749_v18 }
  0x1b   : > { %v229_v1 = vld [vmem:[%s212_s28] sm:$0xff]  ;;  %v231_v2 = vld [vmem:[%s212_s28 + $0x10] sm:$0xff]  ;;  %v230_v3 = vld [vmem:[%s212_s28 + $0x8] sm:$0xff]  ;;  %s3565_s8 = scalar_lea.vmem %s4782_s2, %s2515_s25  ;;  %s2662_s20 = smov 48  }
  0x1c   : > { %295 = vperm.xlu0 %2568, %v229_v1   ;;  %305 = vperm.xlu1 %2569, %v231_v2   ;;  %v232_v4 = vld [vmem:[%s212_s28 + $0x18] sm:$0xff]  ;;  %v233_v5 = vld [vmem:[%s212_s28 + $0x20] sm:$0xff]  ;;  %v234_v6 = vld [vmem:[%s212_s28 + $0x28] sm:$0xff]  ;;  %s2663_s24 = smov 64   ;;  %s2664_s25 = smov 80  }
  0x1d   : > { %v235_v7 = vld [vmem:[%s212_s28 + $0x30] sm:$0xff]  ;;  %v236_v8 = vld [vmem:[%s212_s28 + $0x38] sm:$0xff]  ;;  %v237_v9 = vld [vmem:[%s212_s28 + $0x40] sm:$0xff]  ;;  %s2665_s26 = smov 96   ;;  %s2666_s27 = smov 112  }
  0x1e   : > { %v238_v10 = vld [vmem:[%s212_s28 + $0x48] sm:$0xff]  ;;  %v239_v11 = vld [vmem:[%s212_s28 + $0x50] sm:$0xff]  ;;  %v240_v12 = vld [vmem:[%s212_s28 + $0x58] sm:$0xff]  ;;  %s2417_s29 = sshll.u32 %s4326_s11, 4  ;;  %s2667_s7 = smov [#allocation2]   ;;  %s4736_s29 = int_to_ptr.vmem [resolvable:$true] %s2417_s29 }
  0x1f   : > { %v241_v13 = vld [vmem:[%s212_s28 + $0x60] sm:$0xff]  ;;  %v242_v14 = vld [vmem:[%s212_s28 + $0x68] sm:$0xff]  ;;  %v243_v15 = vld [vmem:[%s212_s28 + $0x70] sm:$0xff]  ;;  %s2593_s6 = scalar_lea.vmem %s4736_s29, 384 }
  0x20   : > { %300 = vperm.xlu0 %2568, %v230_v3   ;;  %310 = vperm.xlu1 %2569, %v232_v4   ;;  %v244_v16 = vld [vmem:[%s212_s28 + $0x78] sm:$0xff]  ;;  %v221_v20 = vld [vmem:[%s2754_s5] sm:$0xff]  ;;  %v222_v22 = vld [vmem:[%s2754_s5 + $0x8] sm:$0xff]  ;;  %s2518_s28 = smul.u32 384, %s2709_s16  ;;  %s2403_s16 = scalar_lea.sflag [#allocation3], %s198_s9 }
  0x21   : > { %v264_v25 = vrot.slane %v221_v20, %v2757_v19  ;;  %v268_v26 = vrot.slane %v222_v22, %v2757_v19  ;;  %v2773_v27 = vrot.slane %v221_v20, %v2761_v21  ;;  %v2776_v28 = vrot.slane %v222_v22, %v2761_v21  ;;  %v223_v36 = vld [vmem:[%s2754_s5 + $0x10] sm:$0xff]  ;;  %v224_v50 = vld [vmem:[%s2754_s5 + $0x18] sm:$0xff]  ;;  %p2594_p11 = scmp.ne.s32.totalorder %s4736_s29, %s2593_s6 }
  0x22   : > { %v2779_v29 = vrot.slane %v221_v20, %v2765_v23  ;;  %v2782_v30 = vrot.slane %v222_v22, %v2765_v23  ;;  %v2785_v33 = vrot.slane %v221_v20, %v2768_v24  ;;  %v2797_v37 = vrot.slane %v222_v22, %v2768_v24  ;;  %v227_v0 = vld [vmem:[%s2754_s5 + $0x30] sm:$0xff]  ;;  %v228_v51 = vld [vmem:[%s2754_s5 + $0x38] sm:$0xff] }
  0x23   : > { %v272_v44 = vrot.slane %v223_v36, %v2757_v19  ;;  %v2840_v54 = vrot.slane %v223_v36, %v2761_v21  ;;  %v2843_v55 = vrot.slane %v223_v36, %v2765_v23  ;;  %v2855_v59 = vrot.slane %v223_v36, %v2768_v24  ;;  %v226_v36 = vld [vmem:[%s2754_s5 + $0x28] sm:$0xff]  ;;  %p2595_p12 = pnand %p2594_p11, %p2726_p5 }
  0x24   : > { %315 = vperm.xlu0 %2568, %v233_v5   ;;  %320 = vperm.xlu1 %2569, %v234_v6   ;;  %v276_v62 = vrot.slane %v224_v50, %v2757_v19  ;;  %v225_v5 = vld [vmem:[%s2754_s5 + $0x20] sm:$0xff]  ;;  %v2993_v17 = vrot.slane %v226_v36, %v2768_v24  ;;  %s4734_s5 = scalar_lea.hbm %s4783_s3, %s2518_s28 }
  0x25   : > { %v280_v20 = vrot.slane %v225_v5, %v2757_v19  ;;  %p2596_p13 = pneg %p2595_p12 }
  0x28   : > { %325 = vperm.xlu0 %2568, %v235_v7   ;;  %330 = vperm.xlu1 %2569, %v236_v8   ;;  %v2978_v7 = vrot.slane %v226_v36, %v2761_v21 }
  0x2c   : > { %335 = vperm.xlu0 %2568, %v237_v9   ;;  %340 = vperm.xlu1 %2569, %v238_v10   ;;  %v2886_v9 = vrot.slane %v224_v50, %v2761_v21  ;;  %v2889_v10 = vrot.slane %v224_v50, %v2765_v23 }
  0x30   : > { %345 = vperm.xlu0 %2568, %v239_v11   ;;  %350 = vperm.xlu1 %2569, %v240_v12  }
  0x34   : > { %355 = vperm.xlu0 %2568, %v241_v13   ;;  %360 = vperm.xlu1 %2569, %v242_v14   ;;  %v2901_v14 = vrot.slane %v224_v50, %v2768_v24 }
  0x38   : > { %365 = vperm.xlu0 %2568, %v243_v15   ;;  %370 = vperm.xlu1 %2569, %v244_v16  }
  0x9b   : > { %v296_v31 = vpop.permute.xlu0 %295  ;;  %v306_v32 = vpop.permute.xlu1 %305 }
  0x9c   : > { %vm2787_vm0 = vcmp.eq.f32.partialorder %v264_v25, %v296_v31  ;;  %vm2791_vm1 = vcmp.eq.f32.partialorder %v268_v26, %v306_v32 }
  0x9d   : > { %v421_v38 = vsel %vm2787_vm0, %v2773_v27, 1e+30  ;;  %v423_v39 = vsel %vm2791_vm1, %v2776_v28, 1e+30  ;;  %v549_v40 = vsel %vm2787_vm0, %v2779_v29, 1e+30 }
  0x9e   : > { %437 = vmin.xlane.f32.xlu0 %v421_v38  ;;  %v551_v41 = vsel %vm2791_vm1, %v2782_v30, 1e+30 }
  0x9f   : > { %v301_v42 = vpop.permute.xlu0 %300  ;;  %v311_v43 = vpop.permute.xlu1 %310 }
  0xa0   : > { %vm2821_vm2 = vcmp.eq.f32.partialorder %v264_v25, %v301_v42  ;;  %vm2825_vm3 = vcmp.eq.f32.partialorder %v268_v26, %v311_v43  ;;  %v2932_v43 = vrot.slane %v225_v5, %v2761_v21  ;;  %v3024_v26 = vrot.slane %v227_v0, %v2761_v21 }
  0xa1   : > { %v422_v53 = vsel %vm2821_vm2, %v2773_v27, 1e+30  ;;  %v424_v56 = vsel %vm2825_vm3, %v2776_v28, 1e+30  ;;  %v550_v57 = vsel %vm2821_vm2, %v2779_v29, 1e+30 }
  0xa2   : > { %439 = vmin.xlane.f32.xlu1 %v422_v53  ;;  %441 = vmin.xlane.f32.xlu0 %v423_v39  ;;  %v552_v58 = vsel %vm2825_vm3, %v2782_v30, 1e+30  ;;  %v4908_v34 = vsel %vm2821_vm2, %v2785_v33, -1e+30  ;;  %v4912_v35 = vsel %vm2825_vm3, %v2797_v37, -1e+30 }
  0xa3   : > { %v316_v60 = vpop.permute.xlu0 %315  ;;  %v321_v61 = vpop.permute.xlu1 %320 }
  0xa4   : > { %vm2867_vm4 = vcmp.eq.f32.partialorder %v272_v44, %v316_v60  ;;  %vm2871_vm5 = vcmp.eq.f32.partialorder %v272_v44, %v321_v61  ;;  %v2935_v44 = vrot.slane %v225_v5, %v2765_v23  ;;  %v2947_v60 = vrot.slane %v225_v5, %v2768_v24 }
  0xa5   : > { %v425_v8 = vsel %vm2867_vm4, %v2840_v54, 1e+30  ;;  %v426_v11 = vsel %vm2871_vm5, %v2840_v54, 1e+30  ;;  %v553_v12 = vsel %vm2867_vm4, %v2843_v55, 1e+30 }
  0xa6   : > { %445 = vmin.xlane.f32.xlu1 %v425_v8  ;;  %443 = vmin.xlane.f32.xlu0 %v424_v56  ;;  %v554_v13 = vsel %vm2871_vm5, %v2843_v55, 1e+30  ;;  %v284_v8 = vrot.slane %v226_v36, %v2757_v19  ;;  %v4916_v3 = vsel %vm2871_vm5, %v2855_v59, -1e+30 }
  0xa7   : > { %v326_v15 = vpop.permute.xlu0 %325  ;;  %v331_v16 = vpop.permute.xlu1 %330 }
  0xa8   : > { %vm2913_vm6 = vcmp.eq.f32.partialorder %v276_v62, %v326_v15  ;;  %vm2917_vm7 = vcmp.eq.f32.partialorder %v276_v62, %v331_v16  ;;  %v3039_v15 = vrot.slane %v227_v0, %v2768_v24 }
  0xa9   : > { %v427_v42 = vsel %vm2913_vm6, %v2886_v9, 1e+30  ;;  %v428_v50 = vsel %vm2917_vm7, %v2886_v9, 1e+30  ;;  %v555_v53 = vsel %vm2913_vm6, %v2889_v10, 1e+30 }
  0xaa   : > { %449 = vmin.xlane.f32.xlu1 %v427_v42  ;;  %447 = vmin.xlane.f32.xlu0 %v426_v11  ;;  %v556_v56 = vsel %vm2917_vm7, %v2889_v10, 1e+30  ;;  %v4919_v31 = vsel %vm2917_vm7, %v2901_v14, -1e+30 }
  0xab   : > { %v336_v61 = vpop.permute.xlu0 %335  ;;  %v341_v62 = vpop.permute.xlu1 %340 }
  0xac   : > { %vm2959_vm8 = vcmp.eq.f32.partialorder %v280_v20, %v336_v61  ;;  %vm2963_vm9 = vcmp.eq.f32.partialorder %v280_v20, %v341_v62  ;;  %v2981_v20 = vrot.slane %v226_v36, %v2765_v23 }
  0xad   : > { %v429_v61 = vsel %vm2959_vm8, %v2932_v43, 1e+30  ;;  %v430_v62 = vsel %vm2963_vm9, %v2932_v43, 1e+30  ;;  %v557_v39 = vsel %vm2959_vm8, %v2935_v44, 1e+30 }
  0xae   : > { %453 = vmin.xlane.f32.xlu1 %v429_v61  ;;  %451 = vmin.xlane.f32.xlu0 %v428_v50  ;;  %v558_v52 = vsel %vm2963_vm9, %v2935_v44, 1e+30  ;;  %v288_v61 = vrot.slane %v227_v0, %v2757_v19  ;;  %v4922_v32 = vsel %vm2963_vm9, %v2947_v60, -1e+30 }
  0xaf   : > { %v346_v38 = vpop.permute.xlu0 %345  ;;  %v351_v16 = vpop.permute.xlu1 %350 }
  0xb0   : > { %vm3005_vm10 = vcmp.eq.f32.partialorder %v284_v8, %v346_v38  ;;  %vm3009_vm11 = vcmp.eq.f32.partialorder %v284_v8, %v351_v16  ;;  %v3027_v8 = vrot.slane %v227_v0, %v2765_v23 }
  0xb1   : > { %v431_v38 = vsel %vm3005_vm10, %v2978_v7, 1e+30  ;;  %v432_v16 = vsel %vm3009_vm11, %v2978_v7, 1e+30  ;;  %v559_v6 = vsel %vm3005_vm10, %v2981_v20, 1e+30 }
  0xb2   : > { %457 = vmin.xlane.f32.xlu1 %v431_v38  ;;  %455 = vmin.xlane.f32.xlu0 %v430_v62  ;;  %v560_v47 = vsel %vm3009_vm11, %v2981_v20, 1e+30  ;;  %v292_v38 = vrot.slane %v228_v51, %v2757_v19  ;;  %v3078_v19 = vrot.slane %v228_v51, %v2765_v23  ;;  %v3093_v23 = vrot.slane %v228_v51, %v2768_v24 }
  0xb3   : > { %v356_v50 = vpop.permute.xlu0 %355  ;;  %v361_v25 = vpop.permute.xlu1 %360  ;;  %v736_v63 = vsel %vm3009_vm11, %v2993_v17, -1e+30 }
  0xb4   : > { %vm3051_vm12 = vcmp.eq.f32.partialorder %v288_v61, %v356_v50  ;;  %vm3055_vm13 = vcmp.eq.f32.partialorder %v288_v61, %v361_v25  ;;  %v3069_v50 = vrot.slane %v228_v51, %v2761_v21  ;;  %v469_v51 = vsel %vm2787_vm0, %v2773_v27, -1e+30 }
  0xb5   : > { %v433_v1 = vsel %vm3051_vm12, %v3024_v26, 1e+30  ;;  %v434_v25 = vsel %vm3055_vm13, %v3024_v26, 1e+30  ;;  %v561_v61 = vsel %vm3051_vm12, %v3027_v8, 1e+30 }
  0xb6   : > { %461 = vmin.xlane.f32.xlu1 %v433_v1  ;;  %459 = vmin.xlane.f32.xlu0 %v432_v16  ;;  %v562_v11 = vsel %vm3055_vm13, %v3027_v8, 1e+30  ;;  %v737_v1 = vsel %vm3051_vm12, %v3039_v15, -1e+30  ;;  %v473_v16 = vsel %vm2867_vm4, %v2840_v54, -1e+30 }
  0xb7   : > { %v366_v62 = vpop.permute.xlu0 %365  ;;  %v371_v21 = vpop.permute.xlu1 %370 }
  0xb8   : > { %vm3095_vm14 = vcmp.eq.f32.partialorder %v292_v38, %v366_v62  ;;  %vm3099_vm15 = vcmp.eq.f32.partialorder %v292_v38, %v371_v21 }
  0xb9   : > { %v435_v24 = vsel %vm3095_vm14, %v3069_v50, 1e+30  ;;  %v436_v38 = vsel %vm3099_vm15, %v3069_v50, 1e+30  ;;  %v563_v62 = vsel %vm3095_vm14, %v3078_v19, 1e+30 }
  0xba   : > { %465 = vmin.xlane.f32.xlu1 %v435_v24  ;;  %463 = vmin.xlane.f32.xlu0 %v434_v25  ;;  %v564_v21 = vsel %vm3099_vm15, %v3078_v19, 1e+30  ;;  %v471_v24 = vsel %vm2791_vm1, %v2776_v28, -1e+30  ;;  %v472_v25 = vsel %vm2825_vm3, %v2776_v28, -1e+30 }
  0xbb   : > { %v476_v28 = vsel %vm2917_vm7, %v2886_v9, -1e+30 }
  0xbe   : > { %485 = vmax.xlane.f32.xlu1 %v469_v51  ;;  %467 = vmin.xlane.f32.xlu0 %v436_v38  ;;  %v470_v38 = vsel %vm2821_vm2, %v2773_v27, -1e+30  ;;  %v475_v51 = vsel %vm2913_vm6, %v2886_v9, -1e+30  ;;  %v474_v27 = vsel %vm2871_vm5, %v2840_v54, -1e+30 }
  0xbf   : > { %v478_v54 = vsel %vm2963_vm9, %v2932_v43, -1e+30  ;;  %v480_v9 = vsel %vm3009_vm11, %v2978_v7, -1e+30 }
  0xc2   : > { %489 = vmax.xlane.f32.xlu1 %v471_v24  ;;  %487 = vmax.xlane.f32.xlu0 %v470_v38  ;;  %v477_v24 = vsel %vm2959_vm8, %v2932_v43, -1e+30  ;;  %v482_v43 = vsel %vm3055_vm13, %v3024_v26, -1e+30  ;;  %v484_v38 = vsel %vm3099_vm15, %v3069_v50, -1e+30 }
  0xc6   : > { %493 = vmax.xlane.f32.xlu1 %v473_v16  ;;  %491 = vmax.xlane.f32.xlu0 %v472_v25  ;;  %v479_v16 = vsel %vm3005_vm10, %v2978_v7, -1e+30  ;;  %v481_v25 = vsel %vm3051_vm12, %v3024_v26, -1e+30  ;;  %v4877_v7 = vsel %vm2959_vm8, %v2935_v44, -1e+30 }
  0xc7   : > { %v4883_v26 = vsel %vm3095_vm14, %v3078_v19, -1e+30 }
  0xca   : > { %497 = vmax.xlane.f32.xlu1 %v475_v51  ;;  %495 = vmax.xlane.f32.xlu0 %v474_v27  ;;  %v483_v51 = vsel %vm3095_vm14, %v3069_v50, -1e+30  ;;  %v4892_v50 = vsel %vm2871_vm5, %v2855_v59, 1e+30 }
  0xce   : > { %501 = vmax.xlane.f32.xlu1 %v477_v24  ;;  %499 = vmax.xlane.f32.xlu0 %v476_v28  ;;  %v4895_v28 = vsel %vm3005_vm10, %v2993_v17, 1e+30 }
  0xd2   : > { %505 = vmax.xlane.f32.xlu1 %v479_v16  ;;  %503 = vmax.xlane.f32.xlu0 %v478_v54  ;;  %v4896_v16 = vsel %vm2963_vm9, %v2947_v60, 1e+30 }
  0xd6   : > { %509 = vmax.xlane.f32.xlu1 %v481_v25  ;;  %507 = vmax.xlane.f32.xlu0 %v480_v9  ;;  %v4897_v9 = vsel %vm3051_vm12, %v3039_v15, 1e+30 }
  0xda   : > { %513 = vmax.xlane.f32.xlu1 %v483_v51  ;;  %511 = vmax.xlane.f32.xlu0 %v482_v43  ;;  %v4898_v51 = vsel %vm3009_vm11, %v2993_v17, 1e+30 }
  0xde   : > { %565 = vmin.xlane.f32.xlu1 %v549_v40  ;;  %515 = vmax.xlane.f32.xlu0 %v484_v38  ;;  %v4787_v40 = vmov 1  }
  0xdf   : > { %2570 = vset.pattern.permute.xlu0 %v4787_v40 }
  0xe2   : > { %569 = vmin.xlane.f32.xlu1 %v551_v41  ;;  %567 = vmin.xlane.f32.xlu0 %v550_v57  ;;  %v4870_v41 = vsel %vm2787_vm0, %v2779_v29, -1e+30  ;;  %v4873_v57 = vsel %vm2867_vm4, %v2843_v55, -1e+30 }
  0xe6   : > { %573 = vmin.xlane.f32.xlu1 %v553_v12  ;;  %571 = vmin.xlane.f32.xlu0 %v552_v58  ;;  %v4874_v58 = vsel %vm2825_vm3, %v2782_v30, -1e+30  ;;  %v4879_v12 = vsel %vm3005_vm10, %v2981_v20, -1e+30 }
  0xea   : > { %577 = vmin.xlane.f32.xlu1 %v555_v53  ;;  %575 = vmin.xlane.f32.xlu0 %v554_v13  ;;  %v4881_v13 = vsel %vm3051_vm12, %v3027_v8, -1e+30  ;;  %v4886_v53 = vsel %vm3099_vm15, %v3078_v19, -1e+30  ;;  %v4891_v19 = vsel %vm2913_vm6, %v2901_v14, 1e+30 }
  0xeb   : > { %vm2014_vm12 = vcmask 786112  }
  0xee   : > { %581 = vmin.xlane.f32.xlu1 %v557_v39  ;;  %579 = vmin.xlane.f32.xlu0 %v556_v56  ;;  %v4884_v39 = vsel %vm3055_vm13, %v3027_v8, -1e+30  ;;  %v4887_v56 = vsel %vm2791_vm1, %v2797_v37, 1e+30  ;;  %v4890_v8 = vsel %vm2825_vm3, %v2797_v37, 1e+30 }
  0xef   : > { %vm1613_vm3 = vcmask 1043459  }
  0xf2   : > { %585 = vmin.xlane.f32.xlu1 %v559_v6  ;;  %583 = vmin.xlane.f32.xlu0 %v558_v52  ;;  %v4872_v52 = vsel %vm2821_vm2, %v2779_v29, -1e+30  ;;  %v4875_v6 = vsel %vm2913_vm6, %v2889_v10, -1e+30  ;;  %v4876_v29 = vsel %vm2871_vm5, %v2843_v55, -1e+30 }
  0xf3   : > { %v4880_v55 = vsel %vm2963_vm9, %v2935_v44, -1e+30  ;;  %v4885_v44 = vsel %vm2787_vm0, %v2785_v33, 1e+30  ;;  %vm1032_vm5 = vcmask 130112   ;;  %vm1619_vm9 = vcmask 1046534  }
  0xf6   : > { %589 = vmin.xlane.f32.xlu1 %v561_v61  ;;  %587 = vmin.xlane.f32.xlu0 %v560_v47  ;;  %v4871_v47 = vsel %vm2791_vm1, %v2782_v30, -1e+30  ;;  %v4878_v30 = vsel %vm2917_vm7, %v2889_v10, -1e+30  ;;  %v4882_v10 = vsel %vm3009_vm11, %v2981_v20, -1e+30 }
  0xf7   : > { %v4889_v20 = vsel %vm2867_vm4, %v2855_v59, 1e+30  ;;  %vm1717_vm11 = vcmask 392512  }
  0xfa   : > { %593 = vmin.xlane.f32.xlu1 %v563_v62  ;;  %591 = vmin.xlane.f32.xlu0 %v562_v11  ;;  %v4888_v11 = vsel %vm2821_vm2, %v2785_v33, 1e+30  ;;  %v4893_v62 = vsel %vm2959_vm8, %v2947_v60, 1e+30  ;;  %vm1611_vm2 = vcmask 1042434  }
  0xfe   : > { %613 = vmax.xlane.f32.xlu1 %v4870_v41  ;;  %595 = vmin.xlane.f32.xlu0 %v564_v21  ;;  %v4894_v21 = vsel %vm2917_vm7, %v2901_v14, 1e+30  ;;  %v4899_v41 = vsel %vm3095_vm14, %v3093_v23, 1e+30  ;;  %vm1615_vm7 = vcmask 1044484  }
 0x102   : > { %617 = vmax.xlane.f32.xlu1 %v4871_v47  ;;  %615 = vmax.xlane.f32.xlu0 %v4872_v52  ;;  %v4900_v47 = vsel %vm3055_vm13, %v3039_v15, 1e+30 }
 0x106   : > { %621 = vmax.xlane.f32.xlu1 %v4873_v57  ;;  %619 = vmax.xlane.f32.xlu0 %v4874_v58  ;;  %v4903_v58 = vsel %vm2787_vm0, %v2785_v33, -1e+30  ;;  %v4915_v33 = vsel %vm2913_vm6, %v2901_v14, -1e+30  ;;  %v4921_v14 = vsel %vm3005_vm10, %v2993_v17, -1e+30 }
 0x107   : > { %vm1816_vm0 = vcmask 523712   ;;  %vm1915_vm6 = vcmask 654912   ;;  %vm1621_vm10 = vcmask 1047559  }
 0x10a   : > { %625 = vmax.xlane.f32.xlu1 %v4875_v6  ;;  %623 = vmax.xlane.f32.xlu0 %v4876_v29  ;;  %v4904_v6 = vsel %vm3099_vm15, %v3093_v23, 1e+30 }
 0x10e   : > { %629 = vmax.xlane.f32.xlu1 %v4877_v7  ;;  %627 = vmax.xlane.f32.xlu0 %v4878_v30  ;;  %v4907_v30 = vsel %vm2791_vm1, %v2797_v37, -1e+30  ;;  %v4918_v37 = vsel %vm2959_vm8, %v2947_v60, -1e+30  ;;  %vm1609_vm1 = vcmask 1041409   ;;  %vm1617_vm8 = vcmask 1045509  }
 0x112   : > { %633 = vmax.xlane.f32.xlu1 %v4879_v12  ;;  %631 = vmax.xlane.f32.xlu0 %v4880_v55 }
 0x116   : > { %637 = vmax.xlane.f32.xlu1 %v4881_v13  ;;  %635 = vmax.xlane.f32.xlu0 %v4882_v10  ;;  %v4911_v13 = vsel %vm2867_vm4, %v2855_v59, -1e+30  ;;  %v4920_v59 = vlaneseq  ;;  %vm1634_vm4 = vcmask 261312  }
 0x11a   : > { %641 = vmax.xlane.f32.xlu1 %v4883_v26  ;;  %639 = vmax.xlane.f32.xlu0 %v4884_v39 }
 0x11e   : > { %693 = vmin.xlane.f32.xlu1 %v4885_v44  ;;  %643 = vmax.xlane.f32.xlu0 %v4886_v53  ;;  %v3472_v44 = vand.u32 127, %v4920_v59 }
 0x120   : > { %v1811_v42 = vadd.s32 4294967240, %v3472_v44 }
 0x122   : > { %697 = vmin.xlane.f32.xlu1 %v4887_v56  ;;  %695 = vmin.xlane.f32.xlu0 %v4888_v11  ;;  %v3499_v5 = vsub.s32 %v1811_v42, %v2749_v18 }
 0x124   : > { %4923 = vst [vmem:[#allocation15_spill] sm:$0xff] %v3499_v5 }
 0x126   : > { %701 = vmin.xlane.f32.xlu1 %v4889_v20  ;;  %699 = vmin.xlane.f32.xlu0 %v4890_v8  ;;  %v1806_v8 = vadd.s32 4294967248, %v3472_v44 }
 0x12a   : > { %705 = vmin.xlane.f32.xlu1 %v4891_v19  ;;  %703 = vmin.xlane.f32.xlu0 %v4892_v50 }
 0x12b   : > { %v3361_v61 = vpop.xlane.xlu0 %437 }
 0x12e   : > { %709 = vmin.xlane.f32.xlu1 %v4893_v62  ;;  %707 = vmin.xlane.f32.xlu0 %v4894_v21 }
 0x12f   : > { %v3371_v27 = vpop.xlane.xlu1 %439  ;;  %v3373_v24 = vpop.xlane.xlu0 %441 }
 0x132   : > { %713 = vmin.xlane.f32.xlu1 %v4895_v28  ;;  %711 = vmin.xlane.f32.xlu0 %v4896_v16 }
 0x133   : > { %v3383_v54 = vpop.xlane.xlu1 %445  ;;  %v3385_v25 = vpop.xlane.xlu0 %443 }
 0x136   : > { %717 = vmin.xlane.f32.xlu1 %v4897_v9  ;;  %715 = vmin.xlane.f32.xlu0 %v4898_v51  ;;  %v3514_v9 = vsub.s32 %v1806_v8, %v2749_v18 }
 0x137   : > { %v3395_v43 = vpop.xlane.xlu1 %449  ;;  %v3397_v38 = vpop.xlane.xlu0 %447 }
 0x138   : > { %4925 = vst [vmem:[#allocation17_spill] sm:$0xff] %v3514_v9 }
 0x13a   : > { %721 = vmin.xlane.f32.xlu1 %v4899_v41  ;;  %719 = vmin.xlane.f32.xlu0 %v4900_v47  ;;  %v4926_v47 = vsel %vm3095_vm14, %v3093_v23, -1e+30  ;;  %vm2231_vm14 = vcmask 261120  }
 0x13b   : > { %v3407_v52 = vpop.xlane.xlu1 %453  ;;  %v3409_v57 = vpop.xlane.xlu0 %451 }
 0x13c   : > { %4901 = vst [vmem:[#allocation6_spill] sm:$0xff] %v3407_v52  ;;  %4902 = vst [vmem:[#allocation7_spill] sm:$0xff] %v3409_v57 }
 0x13e   : > { %741 = vmax.xlane.f32.xlu1 %v4903_v58  ;;  %723 = vmin.xlane.f32.xlu0 %v4904_v6  ;;  %v4927_v58 = vsel %vm3055_vm13, %v3039_v15, -1e+30  ;;  %vm2229_vm13 = vcmask 130048  }
 0x13f   : > { %v3419_v29 = vpop.xlane.xlu1 %457  ;;  %v3421_v7 = vpop.xlane.xlu0 %455 }
 0x140   : > { %4905 = vst [vmem:[#allocation8_spill] sm:$0xff] %v3419_v29  ;;  %4906 = vst [vmem:[#allocation9_spill] sm:$0xff] %v3421_v7  ;;  %v4807_v7 = vmov 2  }
 0x142   : > { %745 = vmax.xlane.f32.xlu1 %v4907_v30  ;;  %743 = vmax.xlane.f32.xlu0 %v4908_v34 }
 0x143   : > { %v3431_v12 = vpop.xlane.xlu1 %461  ;;  %v3433_v55 = vpop.xlane.xlu0 %459 }
 0x144   : > { %4909 = vst [vmem:[#allocation10_spill] sm:$0xff] %v3431_v12  ;;  %4910 = vst [vmem:[#allocation11_spill] sm:$0xff] %v3433_v55  ;;  %v3657_v12 = vsub.s32 %v3472_v44, %v2749_v18 }
 0x146   : > { %749 = vmax.xlane.f32.xlu1 %v4911_v13  ;;  %747 = vmax.xlane.f32.xlu0 %v4912_v35 }
 0x147   : > { %v3443_v10 = vpop.xlane.xlu1 %465  ;;  %v3445_v48 = vpop.xlane.xlu0 %463 }
 0x148   : > { %4913 = vst [vmem:[#allocation12_spill] sm:$0xff] %v3443_v10  ;;  %4914 = vst [vmem:[#allocation13_spill] sm:$0xff] %v3445_v48 }
 0x14a   : > { %753 = vmax.xlane.f32.xlu1 %v4915_v33  ;;  %751 = vmax.xlane.f32.xlu0 %v4916_v3 }
 0x14b   : > { %v3455_v26 = vpop.xlane.xlu1 %485  ;;  %v3457_v49 = vpop.xlane.xlu0 %467 }
 0x14c   : > { %4917 = vst [vmem:[#allocation14_spill] sm:$0xff] %v3457_v49  ;;  %v869_v19 = vsub.f32 %v3455_v26, %v3361_v61  ;;  %v4942_v49 = vmov 0  }
 0x14e   : > { %757 = vmax.xlane.f32.xlu1 %v4918_v37  ;;  %755 = vmax.xlane.f32.xlu0 %v4919_v31  ;;  %v885_v51 = vmax.f32 %v869_v19, 0.0  ;;  %v4930_v37 = vsel %vm3099_vm15, %v3093_v23, -1e+30  ;;  %vm2233_vm15 = vcmask 392192  }
 0x14f   : > { %v3467_v39 = vpop.xlane.xlu1 %489  ;;  %v3469_v4 = vpop.xlane.xlu0 %487 }
 0x150   : > { %v871_v53 = vsub.f32 %v3467_v39, %v3373_v24  ;;  %v870_v56 = vsub.f32 %v3469_v4, %v3371_v27  ;;  %v1810_v13 = vrot.slane %v885_v51, %v3514_v9 }
 0x152   : > { %761 = vmax.xlane.f32.xlu1 %v4921_v14  ;;  %759 = vmax.xlane.f32.xlu0 %v4922_v32  ;;  %v887_v62 = vmax.f32 %v871_v53, 0.0  ;;  %v886_v60 = vmax.f32 %v870_v56, 0.0 }
 0x153   : > { %v3487_v11 = vpop.xlane.xlu1 %493  ;;  %v3489_v20 = vpop.xlane.xlu0 %491 }
 0x154   : > { %v873_v2 = vsub.f32 %v3487_v11, %v3383_v54  ;;  %v872_v50 = vsub.f32 %v3489_v20, %v3385_v25  ;;  %v1821_v36 = vrot.slane %v887_v62, %v3514_v9  ;;  %v1815_v17 = vrot.slane %v886_v60, %v3499_v5  ;;  %v3575_v60 = vld [vmem:[%s3565_s8] sm:$0xff] }
 0x156   : > { %765 = vmax.xlane.f32.xlu1 %v737_v1  ;;  %763 = vmax.xlane.f32.xlu0 %v736_v63  ;;  %v888_v21 = vmax.f32 %v872_v50, 0.0  ;;  %v889_v41 = vmax.f32 %v873_v2, 0.0  ;;  %v1817_v0 = vsel %vm1816_vm0, %v1815_v17, %v1810_v13  ;;  %v259_v13 = vld [vmem:[%s3565_s8 + $0x70] sm:$0xff] }
 0x157   : > { %v3509_v28 = vpop.xlane.xlu1 %497  ;;  %v3511_v16 = vpop.xlane.xlu0 %495 }
 0x158   : > { %4924 = vst [vmem:[#allocation16_spill] sm:$0xff] %v3509_v28  ;;  %v1825_v22 = vrot.slane %v888_v21, %v3499_v5  ;;  %v874_v1 = vsub.f32 %v3511_v16, %v3397_v38  ;;  %v875_v63 = vsub.f32 %v3509_v28, %v3395_v43  ;;  %v1830_v46 = vrot.slane %v889_v41, %v3514_v9  ;;  %v3581_v41 = vld [vmem:[%s3565_s8 + $0x20] sm:$0xff] }
 0x15a   : > { %769 = vmax.xlane.f32.xlu1 %v4926_v47  ;;  %767 = vmax.xlane.f32.xlu0 %v4927_v58  ;;  %v890_v6 = vmax.f32 %v874_v1, 0.0  ;;  %v1826_v35 = vsel %vm1816_vm0, %v1825_v22, %v1821_v36  ;;  %v891_v15 = vmax.f32 %v875_v63, 0.0  ;;  %v3589_v36 = vld [vmem:[%s3565_s8 + $0x30] sm:$0xff] }
 0x15b   : > { %v3531_v30 = vpop.xlane.xlu1 %501  ;;  %v3533_v34 = vpop.xlane.xlu0 %499  ;;  %v1881_v31 = vsel %vm1609_vm1, %v1826_v35, %v1817_v0  ;;  %v3598_v47 = vld [vmem:[%s3565_s8 + $0x50] sm:$0xff] }
 0x15c   : > { %4928 = vst [vmem:[#allocation18_spill] sm:$0xff] %v3531_v30  ;;  %4929 = vst [vmem:[#allocation19_spill] sm:$0xff] %v3533_v34  ;;  %v1834_v33 = vrot.slane %v890_v6, %v3499_v5  ;;  %v876_v3 = vsub.f32 %v3533_v34, %v3409_v57  ;;  %v1839_v32 = vrot.slane %v891_v15, %v3514_v9  ;;  %v3683_v34 = vld [vmem:[%s3565_s8 + $0x8] sm:$0xff] }
 0x15e   : > { %771 = vmax.xlane.f32.xlu0 %v4930_v37  ;;  %v1835_v59 = vsel %vm1816_vm0, %v1834_v33, %v1830_v46  ;;  %v892_v14 = vmax.f32 %v876_v3, 0.0  ;;  %v3613_v33 = vld [vmem:[%s3565_s8 + $0x10] sm:$0xff]  ;;  %v3622_v3 = vld [vmem:[%s3565_s8 + $0x28] sm:$0xff] }
 0x15f   : > { %v3548_v53 = vpop.xlane.xlu1 %505  ;;  %v3550_v42 = vpop.xlane.xlu0 %503  ;;  %v1882_v56 = vsel %vm1611_vm2, %v1835_v59, %v1881_v31  ;;  %v3631_v59 = vld [vmem:[%s3565_s8 + $0x40] sm:$0xff] }
 0x160   : > { %4931 = vst [vmem:[#allocation20_spill] sm:$0xff] %v3548_v53  ;;  %4932 = vst [vmem:[#allocation21_spill] sm:$0xff] %v3550_v42  ;;  %v1843_v8 = vrot.slane %v892_v14, %v3499_v5  ;;  %v1629_v5 = vadd.s32 4294967272, %v3472_v44 }
 0x161   : > { %4939 = vst [vmem:[#allocation28_spill] sm:$0xff] %v3631_v59 }
 0x162   : > { %v1844_v19 = vsel %vm1816_vm0, %v1843_v8, %v1839_v32  ;;  %v3643_v8 = vld [vmem:[%s3565_s8 + $0x60] sm:$0xff]  ;;  %v3671_v42 = vsub.s32 %v1629_v5, %v2749_v18 }
 0x163   : > { %v3555_v45 = vpop.xlane.xlu1 %509  ;;  %v3557_v23 = vpop.xlane.xlu0 %507  ;;  %v3568_v2 = vsel %vm1613_vm3, %v1844_v19, %v1882_v56  ;;  %v3634_v56 = vld [vmem:[%s3565_s8 + $0x48] sm:$0xff]  ;;  %4941 = vst [vmem:[#allocation30_spill] sm:$0xff] %v3643_v8  ;;  %v1027_v19 = vadd.s32 4294967288, %v3472_v44 }
 0x164   : > { %4933 = vst [vmem:[#allocation22_spill] sm:$0xff] %v3555_v45  ;;  %4934 = vst [vmem:[#allocation23_spill] sm:$0xff] %v3557_v23  ;;  %v1910_v45 = vadd.s32 4294967224, %v3472_v44 }
 0x165   : > { %4935 = vst [vmem:[#allocation24_spill] sm:$0xff] %v3568_v2  ;;  %4940 = vst [vmem:[#allocation29_spill] sm:$0xff] %v3634_v56 }
 0x167   : > { %v3570_v50 = vpop.xlane.xlu1 %513  ;;  %v3572_v62 = vpop.xlane.xlu0 %511 }
 0x168   : > { %4936 = vst [vmem:[#allocation25_spill] sm:$0xff] %v3570_v50  ;;  %4937 = vst [vmem:[#allocation26_spill] sm:$0xff] %v3572_v62  ;;  %v3660_v62 = vsub.s32 %v1027_v19, %v2749_v18  ;;  %v3675_v19 = vsub.s32 %v1910_v45, %v2749_v18 }
 0x16b   : > { %967 = vperm.xlu1 %2569, %v3575_v60   ;;  %v566_v21 = vpop.xlane.xlu1 %565  ;;  %v3578_v51 = vpop.xlane.xlu0 %515 }
 0x16c   : > { %4938 = vst [vmem:[#allocation27_spill] sm:$0xff] %v3578_v51 }
 0x16f   : > { %977 = vperm.xlu1 %2569, %v3581_v41   ;;  %v3584_v22 = vpop.xlane.xlu1 %569  ;;  %v3586_v1 = vpop.xlane.xlu0 %567 }
 0x173   : > { %982 = vperm.xlu1 %2569, %v3589_v36   ;;  %v3592_v17 = vpop.xlane.xlu1 %573  ;;  %v3594_v63 = vpop.xlane.xlu0 %571 }
 0x174   : > { %1130 = vperm.xlu0 %2570, %v3575_v60  }
 0x177   : > { %992 = vperm.xlu1 %2569, %v3598_v47   ;;  %v3601_v58 = vpop.xlane.xlu1 %577  ;;  %v3603_v6 = vpop.xlane.xlu0 %575 }
 0x178   : > { %1142 = vperm.xlu0 %2570, %v3589_v36  }
 0x17b   : > { %1002 = vperm.xlu1 %2569, %v259_v13   ;;  %v3607_v35 = vpop.xlane.xlu1 %581  ;;  %v3609_v46 = vpop.xlane.xlu0 %579 }
 0x17c   : > { %1150 = vperm.xlu0 %2570, %v3598_v47  }
 0x17f   : > { %2571 = vset.pattern.permute.xlu1 %v4787_v40  ;;  %v3616_v0 = vpop.xlane.xlu1 %585  ;;  %v3618_v15 = vpop.xlane.xlu0 %583  ;;  %v1905_v40 = vadd.s32 4294967232, %v3472_v44 }
 0x180   : > { %1134 = vperm.xlu1 %2571, %v3613_v33   ;;  %1158 = vperm.xlu0 %2570, %v259_v13   ;;  %v1624_v13 = vadd.s32 4294967280, %v3472_v44 }
 0x182   : > { %v3663_v48 = vsub.s32 %v1624_v13, %v2749_v18 }
 0x183   : > { %v3624_v37 = vpop.xlane.xlu1 %589  ;;  %v3626_v31 = vpop.xlane.xlu0 %587 }
 0x184   : > { %1138 = vperm.xlu1 %2571, %v3581_v41   ;;  %1506 = vperm.xlu0 %2570, %v3622_v3  }
 0x187   : > { %v3636_v14 = vpop.xlane.xlu1 %593  ;;  %v3638_v32 = vpop.xlane.xlu0 %591 }
 0x188   : > { %1146 = vperm.xlu1 %2571, %v3631_v59   ;;  %1514 = vperm.xlu0 %2570, %v3634_v56  }
 0x18b   : > { %v614_v2 = vpop.xlane.xlu1 %613  ;;  %v3648_v50 = vpop.xlane.xlu0 %595 }
 0x18c   : > { %v805_v10 = vadd.f32 %v614_v2, %v566_v21  ;;  %v901_v51 = vsub.f32 %v614_v2, %v566_v21  ;;  %1154 = vperm.xlu1 %2571, %v3643_v8   ;;  %2581 = vset.pattern.permute.xlu0 %v4942_v49  ;;  %v3666_v2 = vsub.s32 %v1905_v40, %v2749_v18 }
 0x18d   : > { %972 = vperm.xlu0 %2581, %v3613_v33  }
 0x18e   : > { %v821_v21 = vmul.f32 0.5, %v805_v10  ;;  %v917_v29 = vmax.f32 %v901_v51, 0.0 }
 0x18f   : > { %v618_v9 = vpop.xlane.xlu1 %617  ;;  %v616_v53 = vpop.xlane.xlu0 %615 }
 0x190   : > { %v807_v23 = vadd.f32 %v618_v9, %v3584_v22  ;;  %v903_v55 = vsub.f32 %v618_v9, %v3584_v22  ;;  %2572 = vset.pattern.permute.xlu1 %v4807_v7  ;;  %v806_v40 = vadd.f32 %v616_v53, %v3586_v1  ;;  %v902_v10 = vsub.f32 %v616_v53, %v3586_v1 }
 0x191   : > { %1282 = vperm.xlu1 %2572, %v3575_v60   ;;  %987 = vperm.xlu0 %2581, %v3631_v59   ;;  %v1628_v5 = vrot.slane %v821_v21, %v3663_v48  ;;  %v1909_v57 = vrot.slane %v917_v29, %v3666_v2 }
 0x192   : > { %v823_v51 = vmul.f32 0.5, %v807_v23  ;;  %v919_v9 = vmax.f32 %v903_v55, 0.0  ;;  %v822_v22 = vmul.f32 0.5, %v806_v40  ;;  %v918_v13 = vmax.f32 %v902_v10, 0.0 }
 0x193   : > { %v622_v7 = vpop.xlane.xlu1 %621  ;;  %v620_v45 = vpop.xlane.xlu0 %619  ;;  %v1180_v23 = vrot.slane %v821_v21, %v3657_v12 }
 0x194   : > { %v809_v53 = vadd.f32 %v622_v7, %v3592_v17  ;;  %v905_v60 = vsub.f32 %v622_v7, %v3592_v17  ;;  %v1633_v55 = vrot.slane %v822_v22, %v3671_v42  ;;  %v1914_v1 = vrot.slane %v918_v13, %v3675_v19 }
 0x195   : > { %v808_v40 = vadd.f32 %v620_v45, %v3594_v63  ;;  %v904_v10 = vsub.f32 %v620_v45, %v3594_v63  ;;  %2573 = vset.pattern.permute.xlu1 %v4942_v49  ;;  %v1639_v59 = vrot.slane %v823_v51, %v3663_v48  ;;  %v1920_v29 = vrot.slane %v919_v9, %v3666_v2  ;;  %v3702_v63 = vld [vmem:[%s3565_s8 + $0x18] sm:$0xff] }
 0x196   : > { %v3696_v18 = vmul.f32 0.5, %v809_v53  ;;  %997 = vperm.xlu0 %2581, %v3643_v8   ;;  %1435 = vperm.xlu1 %2573, %v3683_v34   ;;  %v1184_v7 = vrot.slane %v822_v22, %v3660_v62  ;;  %v921_v17 = vmax.f32 %v905_v60, 0.0  ;;  %v1189_v45 = vrot.slane %v823_v51, %v3657_v12 }
 0x197   : > { %v824_v21 = vmul.f32 0.5, %v808_v40  ;;  %v920_v13 = vmax.f32 %v904_v10, 0.0  ;;  %v626_v30 = vpop.xlane.xlu1 %625  ;;  %v624_v52 = vpop.xlane.xlu0 %623  ;;  %v1635_v56 = vsel %vm1634_vm4, %v1633_v55, %v1628_v5  ;;  %v1916_v9 = vsel %vm1915_vm6, %v1914_v1, %v1909_v57 }
 0x198   : > { %v811_v53 = vadd.f32 %v626_v30, %v3601_v58  ;;  %v907_v8 = vsub.f32 %v626_v30, %v3601_v58  ;;  %v810_v40 = vadd.f32 %v624_v52, %v3603_v6  ;;  %v906_v5 = vsub.f32 %v624_v52, %v3603_v6 }
 0x199   : > { %v1193_v28 = vrot.slane %v824_v21, %v3660_v62  ;;  %v1643_v22 = vrot.slane %v824_v21, %v3671_v42  ;;  %v1924_v60 = vrot.slane %v920_v13, %v3675_v19  ;;  %v4943_v57 = vmov 1   ;;  %v3729_v13 = vld [vmem:[%s3565_s8 + $0x68] sm:$0xff] }
 0x19a   : > { %v3713_v10 = vmul.f32 0.5, %v811_v53  ;;  %v3715_v51 = vmax.f32 %v907_v8, 0.0  ;;  %1440 = vperm.xlu0 %2581, %v3702_v63   ;;  %2574 = vset.pattern.permute.xlu1 %v4943_v57  ;;  %v3721_v30 = vsel %vm1032_vm5, %v1184_v7, %v1180_v23  ;;  %v3725_v1 = vmul.f32 0.5, %v810_v40 }
 0x19b   : > { %4944 = vst [vmem:[#allocation31_spill] sm:$0xff] %v3721_v30  ;;  %v1644_v58 = vsel %vm1634_vm4, %v1643_v22, %v1639_v59  ;;  %v1925_v55 = vsel %vm1915_vm6, %v1924_v60, %v1920_v29  ;;  %1498 = vperm.xlu1 %2574, %v3683_v34   ;;  %v630_v21 = vpop.xlane.xlu1 %629  ;;  %v628_v8 = vpop.xlane.xlu0 %627  ;;  %v3732_v52 = vsel %vm1032_vm5, %v1193_v28, %v1189_v45  ;;  %v922_v53 = vmax.f32 %v906_v5, 0.0 }
 0x19c   : > { %4945 = vst [vmem:[#allocation32_spill] sm:$0xff] %v3732_v52  ;;  %v1648_v6 = vrot.slane %v3696_v18, %v3663_v48  ;;  %v1929_v23 = vrot.slane %v921_v17, %v3666_v2  ;;  %v1699_v59 = vsel %vm1609_vm1, %v1644_v58, %v1635_v56  ;;  %v1980_v29 = vsel %vm1609_vm1, %v1925_v55, %v1916_v9 }
 0x19d   : > { %v1657_v7 = vrot.slane %v3713_v10, %v3663_v48  ;;  %v1652_v22 = vrot.slane %v3725_v1, %v3671_v42  ;;  %v813_v60 = vadd.f32 %v630_v21, %v3607_v35  ;;  %v1938_v28 = vrot.slane %v3715_v51, %v3666_v2 }
 0x19e   : > { %v909_v45 = vsub.f32 %v630_v21, %v3607_v35  ;;  %v812_v17 = vadd.f32 %v628_v8, %v3609_v46  ;;  %v908_v56 = vsub.f32 %v628_v8, %v3609_v46  ;;  %1465 = vperm.xlu0 %2581, %v3729_v13   ;;  %v1933_v5 = vrot.slane %v922_v53, %v3675_v19 }
 0x19f   : > { %v1653_v40 = vsel %vm1634_vm4, %v1652_v22, %v1648_v6  ;;  %2575 = vset.pattern.permute.xlu1 %v4942_v49  ;;  %v634_v58 = vpop.xlane.xlu1 %633  ;;  %v632_v55 = vpop.xlane.xlu0 %631  ;;  %v1207_v35 = vrot.slane %v3713_v10, %v3657_v12  ;;  %v3758_v21 = vmul.f32 0.5, %v813_v60  ;;  %v4946_v60 = vmov 2  }
 0x1a0   : > { %v1700_v51 = vsel %vm1611_vm2, %v1653_v40, %v1699_v59  ;;  %v828_v46 = vmul.f32 0.5, %v812_v17  ;;  %v924_v8 = vmax.f32 %v908_v56, 0.0  ;;  %1445 = vperm.xlu1 %2575, %v3622_v3   ;;  %v1934_v9 = vsel %vm1915_vm6, %v1933_v5, %v1929_v23 }
 0x1a1   : > { %v925_v6 = vmax.f32 %v909_v45, 0.0  ;;  %v815_v53 = vadd.f32 %v634_v58, %v3616_v0  ;;  %v911_v22 = vsub.f32 %v634_v58, %v3616_v0  ;;  %v1981_v52 = vsel %vm1611_vm2, %v1934_v9, %v1980_v29 }
 0x1a2   : > { %v1211_v10 = vrot.slane %v828_v46, %v3660_v62  ;;  %v1661_v59 = vrot.slane %v828_v46, %v3671_v42  ;;  %2586 = vset.pattern.permute.xlu0 %v4946_v60  ;;  %v1942_v56 = vrot.slane %v924_v8, %v3675_v19  ;;  %v814_v40 = vadd.f32 %v632_v55, %v3618_v15 }
 0x1a3   : > { %v3771_v23 = vmul.f32 0.5, %v815_v53  ;;  %v927_v45 = vmax.f32 %v911_v22, 0.0  ;;  %1286 = vperm.xlu0 %2586, %v3613_v33   ;;  %v638_v0 = vpop.xlane.xlu1 %637  ;;  %v636_v29 = vpop.xlane.xlu0 %635  ;;  %v910_v5 = vsub.f32 %v632_v55, %v3618_v15  ;;  %v1666_v8 = vrot.slane %v3758_v21, %v3663_v48 }
 0x1a4   : > { %v1662_v9 = vsel %vm1634_vm4, %v1661_v59, %v1657_v7  ;;  %v817_v58 = vadd.f32 %v638_v0, %v3624_v37  ;;  %v913_v46 = vsub.f32 %v638_v0, %v3624_v37  ;;  %2576 = vset.pattern.permute.xlu1 %v4943_v57  ;;  %v1947_v53 = vrot.slane %v925_v6, %v3666_v2 }
 0x1a5   : > { %v1701_v33 = vsel %vm1613_vm3, %v1662_v9, %v1700_v51  ;;  %v1943_v22 = vsel %vm1915_vm6, %v1942_v56, %v1938_v28  ;;  %1502 = vperm.xlu1 %2576, %v3702_v63   ;;  %v1675_v37 = vrot.slane %v3771_v23, %v3663_v48  ;;  %v3789_v7 = vmul.f32 0.5, %v814_v40  ;;  %v252_v56 = vld [vmem:[%s3565_s8 + $0x38] sm:$0xff] }
 0x1a6   : > { %v1982_v15 = vsel %vm1613_vm3, %v1943_v22, %v1981_v52  ;;  %v926_v55 = vmax.f32 %v910_v5, 0.0  ;;  %v3791_v59 = vmul.f32 0.5, %v817_v58  ;;  %v816_v0 = vadd.f32 %v636_v29, %v3626_v31 }
 0x1a7   : > { %v912_v6 = vsub.f32 %v636_v29, %v3626_v31  ;;  %1554 = vperm.xlu0 %2586, %v3683_v34   ;;  %v642_v51 = vpop.xlane.xlu1 %641  ;;  %v640_v28 = vpop.xlane.xlu0 %639  ;;  %v3798_v9 = vsel %vm1032_vm5, %v1211_v10, %v1207_v35  ;;  %v1956_v52 = vrot.slane %v927_v45, %v3666_v2  ;;  %v1670_v40 = vrot.slane %v3789_v7, %v3671_v42 }
 0x1a8   : > { %4947 = vst [vmem:[#allocation33_spill] sm:$0xff] %v3798_v9  ;;  %v1951_v5 = vrot.slane %v926_v55, %v3675_v19  ;;  %v929_v58 = vmax.f32 %v913_v46, 0.0  ;;  %v1220_v22 = vrot.slane %v3789_v7, %v3660_v62  ;;  %v832_v31 = vmul.f32 0.5, %v816_v0 }
 0x1a9   : > { %v928_v29 = vmax.f32 %v912_v6, 0.0  ;;  %v819_v34 = vadd.f32 %v642_v51, %v3636_v14  ;;  %2577 = vset.pattern.permute.xlu1 %v4942_v49  ;;  %v1671_v35 = vsel %vm1634_vm4, %v1670_v40, %v1666_v8  ;;  %v915_v45 = vsub.f32 %v642_v51, %v3636_v14 }
 0x1aa   : > { %v1952_v10 = vsel %vm1915_vm6, %v1951_v5, %v1947_v53  ;;  %v818_v17 = vadd.f32 %v640_v28, %v3638_v32  ;;  %1450 = vperm.xlu1 %2577, %v252_v56   ;;  %v1702_v46 = vsel %vm1615_vm7, %v1671_v35, %v1701_v33  ;;  %v1684_v7 = vrot.slane %v3791_v59, %v3663_v48 }
 0x1ab   : > { %v1983_v55 = vsel %vm1615_vm7, %v1952_v10, %v1982_v15  ;;  %v1679_v0 = vrot.slane %v832_v31, %v3671_v42  ;;  %1294 = vperm.xlu0 %2586, %v3589_v36   ;;  %v3818_v6 = vpop.xlane.xlu1 %693  ;;  %v644_v8 = vpop.xlane.xlu0 %643  ;;  %v1965_v53 = vrot.slane %v929_v58, %v3666_v2  ;;  %v1960_v14 = vrot.slane %v928_v29, %v3675_v19 }
 0x1ac   : > { %v931_v51 = vmax.f32 %v915_v45, 0.0  ;;  %v834_v40 = vmul.f32 0.5, %v818_v17  ;;  %v914_v15 = vsub.f32 %v640_v28, %v3638_v32  ;;  %v820_v5 = vadd.f32 %v644_v8, %v3648_v50 }
 0x1ad   : > { %v1680_v33 = vsel %vm1634_vm4, %v1679_v0, %v1675_v37  ;;  %v916_v35 = vsub.f32 %v644_v8, %v3648_v50  ;;  %v1229_v10 = vrot.slane %v832_v31, %v3660_v62  ;;  %v1961_v9 = vsel %vm1915_vm6, %v1960_v14, %v1956_v52 }
 0x1ae   : > { %v1703_v36 = vsel %vm1617_vm8, %v1680_v33, %v1702_v46  ;;  %v3829_v30 = vmul.f32 0.5, %v819_v34  ;;  %2578 = vset.pattern.permute.xlu1 %v4943_v57  ;;  %v1984_v17 = vsel %vm1617_vm8, %v1961_v9, %v1983_v55  ;;  %v1974_v37 = vrot.slane %v931_v51, %v3666_v2 }
 0x1af   : > { %v930_v58 = vmax.f32 %v914_v15, 0.0  ;;  %v1688_v32 = vrot.slane %v834_v40, %v3671_v42  ;;  %1566 = vperm.xlu0 %2586, %v252_v56   ;;  %1510 = vperm.xlu1 %2578, %v252_v56   ;;  %v3835_v50 = vpop.xlane.xlu1 %697  ;;  %v3837_v28 = vpop.xlane.xlu0 %695  ;;  %v1238_v31 = vrot.slane %v834_v40, %v3660_v62  ;;  %v3840_v52 = vmul.f32 0.5, %v820_v5 }
 0x1b0   : > { %v932_v29 = vmax.f32 %v916_v35, 0.0  ;;  %v1225_v34 = vrot.slane %v3771_v23, %v3657_v12  ;;  %v4948_v45 = vrot.slane %v3696_v18, %v3657_v12  ;;  %v4949_v56 = vrot.slane %v3725_v1, %v3660_v62 }
 0x1b1   : > { %v1689_v9 = vsel %vm1634_vm4, %v1688_v32, %v1684_v7  ;;  %v1969_v2 = vrot.slane %v930_v58, %v3675_v19  ;;  %v1216_v55 = vrot.slane %v3758_v21, %v3657_v12  ;;  %v1247_v23 = vrot.slane %v3840_v52, %v3660_v62  ;;  %v4959_v58 = vld [vmem:[#allocation18_spill] sm:$0xff] }
 0x1b2   : > { %v3853_v46 = vsel %vm1032_vm5, %v4949_v56, %v4948_v45  ;;  %v1978_v7 = vrot.slane %v932_v29, %v3675_v19  ;;  %v3861_v0 = vsel %vm1032_vm5, %v1229_v10, %v1225_v34  ;;  %v1243_v18 = vrot.slane %v3829_v30, %v3657_v12  ;;  %v4962_v45 = vld [vmem:[#allocation19_spill] sm:$0xff] }
 0x1b3   : > { %4950 = vst [vmem:[#allocation34_spill] sm:$0xff] %v3853_v46  ;;  %4951 = vst [vmem:[#allocation35_spill] sm:$0xff] %v3861_v0  ;;  %v1970_v1 = vsel %vm1915_vm6, %v1969_v2, %v1965_v53  ;;  %1302 = vperm.xlu0 %2586, %v3598_v47   ;;  %2579 = vset.pattern.permute.xlu1 %v4946_v60  ;;  %v3868_v8 = vpop.xlane.xlu1 %701  ;;  %v3870_v21 = vpop.xlane.xlu0 %699  ;;  %v3873_v14 = vsel %vm1032_vm5, %v1220_v22, %v1216_v55  ;;  %v3880_v53 = vld [vmem:[%s3565_s8 + $0x58] sm:$0xff]  ;;  %v4961_v2 = vld [vmem:[#allocation7_spill] sm:$0xff] }
 0x1b4   : > { %4952 = vst [vmem:[#allocation36_spill] sm:$0xff] %v3873_v14  ;;  %v1234_v19 = vrot.slane %v3791_v59, %v3657_v12  ;;  %v1979_v51 = vsel %vm1915_vm6, %v1978_v7, %v1974_v37  ;;  %1290 = vperm.xlu1 %2579, %v3581_v41   ;;  %v3883_v47 = vsel %vm1032_vm5, %v1247_v23, %v1243_v18  ;;  %v4958_v37 = vld [vmem:[#allocation6_spill] sm:$0xff]  ;;  %v1712_v7 = vadd.s32 4294967256, %v3472_v44  ;;  %v4979_v14 = vld [vmem:[#allocation27_spill] sm:$0xff] }
 0x1b5   : > { %4953 = vst [vmem:[#allocation37_spill] sm:$0xff] %v3883_v47  ;;  %v3886_v40 = vsel %vm1619_vm9, %v1689_v9, %v1703_v36  ;;  %v773_v22 = vadd.f32 %v3455_v26, %v3361_v61  ;;  %v774_v59 = vadd.f32 %v3469_v4, %v3371_v27  ;;  %v1985_v41 = vsel %vm1619_vm9, %v1970_v1, %v1984_v17  ;;  %v4956_v4 = vld [vmem:[#allocation16_spill] sm:$0xff]  ;;  %v4960_v9 = vld [vmem:[#allocation5_spill] sm:$0xff]  ;;  %v3933_v55 = vld [vmem:[%s3565_s8 + $0x78] sm:$0xff] }
 0x1b6   : > { %v3893_v33 = vsel %vm1032_vm5, %v1238_v31, %v1234_v19  ;;  %v775_v15 = vadd.f32 %v3467_v39, %v3373_v24  ;;  %v776_v5 = vadd.f32 %v3489_v20, %v3385_v25  ;;  %v778_v35 = vadd.f32 %v3511_v16, %v3397_v38  ;;  %v4957_v16 = vld [vmem:[#allocation29_spill] sm:$0xff] }
 0x1b7   : > { %4954 = vst [vmem:[#allocation38_spill] sm:$0xff] %v3893_v33  ;;  %v3903_v10 = vsel %vm1621_vm10, %v1979_v51, %v1985_v41  ;;  %v777_v61 = vadd.f32 %v3487_v11, %v3383_v54  ;;  %1574 = vperm.xlu0 %2586, %v3880_v53   ;;  %v3908_v27 = vpop.xlane.xlu1 %705  ;;  %v3910_v26 = vpop.xlane.xlu0 %703  ;;  %v1707_v24 = vadd.s32 4294967264, %v3472_v44  ;;  %v2004_v25 = vadd.s32 4294967216, %v3472_v44  ;;  %v4978_v33 = vld [vmem:[#allocation14_spill] sm:$0xff] }
 0x1b8   : > { %4955 = vst [vmem:[#allocation39_spill] sm:$0xff] %v3903_v10  ;;  %2580 = vset.pattern.permute.xlu1 %v4942_v49  ;;  %v789_v38 = vmul.f32 0.5, %v773_v22  ;;  %v790_v39 = vmul.f32 0.5, %v774_v59  ;;  %v779_v20 = vadd.f32 %v4956_v4, %v3395_v43  ;;  %v791_v54 = vmul.f32 0.5, %v775_v15  ;;  %v4963_v22 = vld [vmem:[#allocation9_spill] sm:$0xff] }
 0x1b9   : > { %1455 = vperm.xlu1 %2580, %v4957_v16   ;;  %v792_v11 = vmul.f32 0.5, %v776_v5  ;;  %v794_v36 = vmul.f32 0.5, %v778_v35  ;;  %v793_v17 = vmul.f32 0.5, %v777_v61  ;;  %v781_v32 = vadd.f32 %v4959_v58, %v4958_v37  ;;  %v4964_v59 = vld [vmem:[#allocation21_spill] sm:$0xff] }
 0x1ba   : > { %v877_v31 = vsub.f32 %v4959_v58, %v4958_v37  ;;  %v3928_v43 = vsub.s32 %v1707_v24, %v4960_v9  ;;  %v780_v56 = vadd.f32 %v4962_v45, %v4961_v2  ;;  %v3936_v23 = vsub.s32 %v2004_v25, %v4960_v9  ;;  %v4968_v37 = vld [vmem:[#allocation20_spill] sm:$0xff] }
 0x1bb   : > { %1578 = vperm.xlu0 %2586, %v3729_v13   ;;  %v3923_v29 = vpop.xlane.xlu1 %709  ;;  %v3925_v34 = vpop.xlane.xlu0 %707  ;;  %v2009_v18 = vadd.s32 4294967208, %v3472_v44  ;;  %v1026_v1 = vrot.slane %v789_v38, %v3657_v12  ;;  %v1031_v19 = vrot.slane %v790_v39, %v3660_v62  ;;  %v795_v51 = vmul.f32 0.5, %v779_v20  ;;  %v4965_v38 = vld [vmem:[#allocation11_spill] sm:$0xff] }
 0x1bc   : > { %v878_v41 = vsub.f32 %v4964_v59, %v4963_v22  ;;  %v1037_v15 = vrot.slane %v791_v54, %v3657_v12  ;;  %v1041_v5 = vrot.slane %v792_v11, %v3660_v62  ;;  %v1050_v35 = vrot.slane %v794_v36, %v3660_v62  ;;  %v4966_v39 = vld [vmem:[#allocation23_spill] sm:$0xff]  ;;  %v4967_v36 = vld [vmem:[#allocation8_spill] sm:$0xff] }
 0x1bd   : > { %2582 = vset.pattern.permute.xlu1 %v4946_v60  ;;  %v782_v61 = vadd.f32 %v4964_v59, %v4963_v22  ;;  %v1046_v44 = vrot.slane %v793_v17, %v3657_v12  ;;  %v797_v24 = vmul.f32 0.5, %v781_v32  ;;  %v893_v25 = vmax.f32 %v877_v31, 0.0 }
 0x1be   : > { %1558 = vperm.xlu1 %2582, %v3702_v63   ;;  %v880_v4 = vsub.f32 %v4966_v39, %v4965_v38  ;;  %v796_v11 = vmul.f32 0.5, %v780_v56  ;;  %v879_v58 = vsub.f32 %v4968_v37, %v4967_v36  ;;  %v3962_v2 = vsub.s32 %v1712_v7, %v4960_v9 }
 0x1bf   : > { %1582 = vperm.xlu0 %2586, %v3933_v55   ;;  %v3955_v20 = vpop.xlane.xlu1 %713  ;;  %v3957_v54 = vpop.xlane.xlu0 %711  ;;  %v3965_v63 = vsub.s32 %v2009_v18, %v4960_v9  ;;  %v1055_v17 = vrot.slane %v795_v51, %v3657_v12  ;;  %v894_v32 = vmax.f32 %v878_v41, 0.0  ;;  %v784_v31 = vadd.f32 %v4966_v39, %v4965_v38  ;;  %v4971_v51 = vld [vmem:[#allocation17_spill] sm:$0xff] }
 0x1c0   : > { %v3971_v45 = vsel %vm1032_vm5, %v1031_v19, %v1026_v1  ;;  %v783_v56 = vadd.f32 %v4968_v37, %v4967_v36  ;;  %v798_v22 = vmul.f32 0.5, %v782_v61  ;;  %v3977_v7 = vsel %vm1032_vm5, %v1050_v35, %v1046_v44  ;;  %v4972_v38 = vld [vmem:[#allocation13_spill] sm:$0xff]  ;;  %v4973_v1 = vld [vmem:[#allocation26_spill] sm:$0xff] }
 0x1c1   : > { %4969 = vst [vmem:[#allocation16_spill] sm:$0xff] %v3971_v45  ;;  %v3980_v9 = vsel %vm1032_vm5, %v1041_v5, %v1037_v15  ;;  %v1064_v18 = vrot.slane %v797_v24, %v3657_v12  ;;  %v1848_v59 = vrot.slane %v893_v25, %v4971_v51  ;;  %v896_v41 = vmax.f32 %v880_v4, 0.0  ;;  %v4975_v35 = vld [vmem:[#allocation10_spill] sm:$0xff]  ;;  %v4977_v5 = vld [vmem:[#allocation15_spill] sm:$0xff] }
 0x1c2   : > { %1562 = vperm.xlu1 %2582, %v3622_v3   ;;  %4970 = vst [vmem:[#allocation29_spill] sm:$0xff] %v3980_v9  ;;  %v786_v19 = vadd.f32 %v4973_v1, %v4972_v38  ;;  %v1059_v3 = vrot.slane %v796_v11, %v3660_v62  ;;  %v895_v61 = vmax.f32 %v879_v58, 0.0  ;;  %v4976_v44 = vld [vmem:[#allocation22_spill] sm:$0xff]  ;;  %v882_v15 = vsub.f32 %v4973_v1, %v4972_v38  ;;  %v4980_v38 = vld [vmem:[#allocation12_spill] sm:$0xff]  ;;  %v4981_v1 = vld [vmem:[#allocation25_spill] sm:$0xff] }
 0x1c3   : > { %v3986_v39 = vpop.xlane.xlu1 %717  ;;  %v3988_v36 = vpop.xlane.xlu0 %715  ;;  %v785_v37 = vadd.f32 %v4976_v44, %v4975_v35  ;;  %v1852_v24 = vrot.slane %v894_v32, %v4977_v5  ;;  %v881_v25 = vsub.f32 %v4976_v44, %v4975_v35  ;;  %v800_v4 = vmul.f32 0.5, %v784_v31 }
 0x1c4   : > { %4974 = vst [vmem:[#allocation6_spill] sm:$0xff] %v3988_v36  ;;  %v788_v46 = vadd.f32 %v4979_v14, %v4978_v33  ;;  %v799_v47 = vmul.f32 0.5, %v783_v56  ;;  %v1068_v0 = vrot.slane %v798_v22, %v3660_v62  ;;  %v884_v11 = vsub.f32 %v4979_v14, %v4978_v33 }
 0x1c5   : > { %v1610_v58 = vsel %vm1609_vm1, %v3980_v9, %v3971_v45  ;;  %v1861_v32 = vrot.slane %v896_v41, %v4977_v5  ;;  %v787_v31 = vadd.f32 %v4981_v1, %v4980_v38  ;;  %v883_v35 = vsub.f32 %v4981_v1, %v4980_v38 }
 0x1c6   : > { %2583 = vset.pattern.permute.xlu1 %v4942_v49  ;;  %v802_v56 = vmul.f32 0.5, %v786_v19  ;;  %v1857_v33 = vrot.slane %v895_v61, %v4971_v51  ;;  %v801_v44 = vmul.f32 0.5, %v785_v37  ;;  %v898_v10 = vmax.f32 %v882_v15, 0.0 }
 0x1c7   : > { %1460 = vperm.xlu1 %2583, %v3880_v53   ;;  %v4013_v22 = vpop.xlane.xlu1 %721  ;;  %v4015_v14 = vpop.xlane.xlu0 %719  ;;  %v4019_v9 = vsel %vm1032_vm5, %v1059_v3, %v1055_v17  ;;  %v1853_v41 = vsel %vm1816_vm0, %v1852_v24, %v1848_v59  ;;  %v897_v45 = vmax.f32 %v881_v25, 0.0  ;;  %v1077_v36 = vrot.slane %v800_v4, %v3660_v62 }
 0x1c8   : > { %4982 = vst [vmem:[#allocation18_spill] sm:$0xff] %v4013_v22  ;;  %4983 = vst [vmem:[#allocation5_spill] sm:$0xff] %v4015_v14  ;;  %v804_v38 = vmul.f32 0.5, %v788_v46  ;;  %v1073_v19 = vrot.slane %v799_v47, %v3657_v12  ;;  %v900_v1 = vmax.f32 %v884_v11, 0.0  ;;  %v1612_v22 = vsel %vm1611_vm2, %v3977_v7, %v1610_v58  ;;  %v4984_v46 = vld [vmem:[#allocation24_spill] sm:$0xff] }
 0x1c9   : > { %v4027_v14 = vsel %vm1032_vm5, %v1068_v0, %v1064_v18  ;;  %v1862_v61 = vsel %vm1816_vm0, %v1861_v32, %v1857_v33  ;;  %v803_v37 = vmul.f32 0.5, %v787_v31  ;;  %v899_v17 = vmax.f32 %v883_v35, 0.0 }
 0x1ca   : > { %v1086_v3 = vrot.slane %v802_v56, %v3660_v62  ;;  %v1884_v47 = vsel %vm1615_vm7, %v1853_v41, %v4984_v46  ;;  %v1082_v24 = vrot.slane %v801_v44, %v3657_v12  ;;  %v1870_v25 = vrot.slane %v898_v10, %v4977_v5 }
 0x1cb   : > { %2584 = vset.pattern.permute.xlu1 %v4943_v57  ;;  %v742_v59 = vpop.xlane.xlu1 %741  ;;  %v4032_v15 = vpop.xlane.xlu0 %723  ;;  %v1614_v0 = vsel %vm1613_vm3, %v4019_v9, %v1612_v22  ;;  %v1866_v18 = vrot.slane %v897_v45, %v4971_v51  ;;  %v1095_v4 = vrot.slane %v804_v38, %v3660_v62  ;;  %v4045_v58 = vsel %vm1032_vm5, %v1077_v36, %v1073_v19  ;;  %v4985_v38 = vld [vmem:[#allocation28_spill] sm:$0xff] }
 0x1cc   : > { %1518 = vperm.xlu1 %2584, %v3880_v53   ;;  %v837_v11 = vadd.f32 %v742_v59, %v3818_v6  ;;  %v1885_v32 = vsel %vm1617_vm8, %v1862_v61, %v1884_v47  ;;  %v1879_v31 = vrot.slane %v900_v1, %v4977_v5  ;;  %v1697_v10 = vrot.slane %v3840_v52, %v3671_v42 }
 0x1cd   : > { %v1616_v53 = vsel %vm1615_vm7, %v4027_v14, %v1614_v0  ;;  %v1091_v35 = vrot.slane %v803_v37, %v3657_v12  ;;  %v1875_v45 = vrot.slane %v899_v17, %v4971_v51  ;;  %v933_v56 = vsub.f32 %v742_v59, %v3818_v6 }
 0x1ce   : > { %v4057_v36 = vsel %vm1032_vm5, %v1086_v3, %v1082_v24  ;;  %v1871_v44 = vsel %vm1816_vm0, %v1870_v25, %v1866_v18  ;;  %v1693_v5 = vrot.slane %v3829_v30, %v3663_v48  ;;  %v1618_v52 = vsel %vm1617_vm8, %v4045_v58, %v1616_v53 }
 0x1cf   : > { %v746_v22 = vpop.xlane.xlu1 %745  ;;  %v744_v33 = vpop.xlane.xlu0 %743  ;;  %v853_v51 = vmul.f32 0.5, %v837_v11  ;;  %v4070_v19 = vsel %vm1032_vm5, %v1095_v4, %v1091_v35  ;;  %v1880_v48 = vsel %vm1816_vm0, %v1879_v31, %v1875_v45  ;;  %v1620_v61 = vsel %vm1619_vm9, %v4057_v36, %v1618_v52 }
 0x1d0   : > { %v839_v42 = vadd.f32 %v746_v22, %v3835_v50  ;;  %2585 = vset.pattern.permute.xlu1 %v4946_v60  ;;  %v838_v6 = vadd.f32 %v744_v33, %v3837_v28  ;;  %v934_v41 = vsub.f32 %v744_v33, %v3837_v28  ;;  %v1698_v30 = vsel %vm1634_vm4, %v1697_v10, %v1693_v5 }
 0x1d1   : > { %1298 = vperm.xlu1 %2585, %v4985_v38   ;;  %v935_v1 = vsub.f32 %v746_v22, %v3835_v50  ;;  %v949_v37 = vmax.f32 %v933_v56, 0.0  ;;  %v1886_v46 = vsel %vm1619_vm9, %v1871_v44, %v1885_v32  ;;  %v4084_v0 = vsel %vm1621_vm10, %v4070_v19, %v1620_v61 }
 0x1d2   : > { %v4077_v17 = vmul.f32 0.5, %v839_v42  ;;  %v854_v3 = vmul.f32 0.5, %v838_v6  ;;  %v950_v47 = vmax.f32 %v934_v41, 0.0  ;;  %v1332_v50 = vrot.slane %v853_v51, %v3657_v12 }
 0x1d3   : > { %v750_v59 = vpop.xlane.xlu1 %749  ;;  %v748_v28 = vpop.xlane.xlu0 %747  ;;  %v4091_v4 = vsel %vm1621_vm10, %v1698_v30, %v3886_v40  ;;  %v4094_v11 = vsel %vm1621_vm10, %v1880_v48, %v1886_v46  ;;  %v1711_v32 = vrot.slane %v853_v51, %v3928_v43  ;;  %v2008_v53 = vrot.slane %v949_v37, %v3936_v23 }
 0x1d4   : > { %v841_v24 = vadd.f32 %v750_v59, %v3868_v8  ;;  %v937_v25 = vsub.f32 %v750_v59, %v3868_v8  ;;  %v1336_v18 = vrot.slane %v854_v3, %v3660_v62  ;;  %v951_v8 = vmax.f32 %v935_v1, 0.0 }
 0x1d5   : > { %2587 = vset.pattern.permute.xlu1 %v4943_v57  ;;  %v840_v31 = vadd.f32 %v748_v28, %v3870_v21  ;;  %v936_v10 = vsub.f32 %v748_v28, %v3870_v21  ;;  %v1341_v35 = vrot.slane %v4077_v17, %v3657_v12  ;;  %v1716_v40 = vrot.slane %v854_v3, %v3962_v2 }
 0x1d6   : > { %1522 = vperm.xlu1 %2587, %v3729_v13   ;;  %v4105_v22 = vsel %vm1032_vm5, %v1336_v18, %v1332_v50  ;;  %v2013_v33 = vrot.slane %v950_v47, %v3965_v63  ;;  %v4108_v44 = vmul.f32 0.5, %v841_v24  ;;  %v953_v5 = vmax.f32 %v937_v25, 0.0 }
 0x1d7   : > { %v754_v45 = vpop.xlane.xlu1 %753  ;;  %v752_v56 = vpop.xlane.xlu0 %751  ;;  %v4110_v21 = vmul.f32 0.5, %v840_v31  ;;  %v952_v13 = vmax.f32 %v936_v10, 0.0  ;;  %v1722_v6 = vrot.slane %v4077_v17, %v3928_v43  ;;  %v2019_v41 = vrot.slane %v951_v8, %v3936_v23 }
 0x1d8   : > { %v843_v42 = vadd.f32 %v754_v45, %v3908_v27  ;;  %v939_v52 = vsub.f32 %v754_v45, %v3908_v27  ;;  %v842_v51 = vadd.f32 %v752_v56, %v3910_v26  ;;  %v938_v48 = vsub.f32 %v752_v56, %v3910_v26 }
 0x1d9   : > { %v1726_v38 = vrot.slane %v4110_v21, %v3962_v2  ;;  %v1718_v30 = vsel %vm1717_vm11, %v1716_v40, %v1711_v32  ;;  %v2023_v1 = vrot.slane %v952_v13, %v3965_v63  ;;  %v2015_v59 = vsel %vm2014_vm12, %v2013_v33, %v2008_v53 }
 0x1da   : > { %2588 = vset.pattern.permute.xlu1 %v4946_v60  ;;  %v4124_v61 = vmul.f32 0.5, %v843_v42  ;;  %v4126_v27 = vmul.f32 0.5, %v842_v51  ;;  %v1350_v28 = vrot.slane %v4108_v44, %v3657_v12  ;;  %v954_v46 = vmax.f32 %v938_v48, 0.0 }
 0x1db   : > { %1570 = vperm.xlu1 %2588, %v4957_v16   ;;  %v758_v37 = vpop.xlane.xlu1 %757  ;;  %v756_v3 = vpop.xlane.xlu0 %755  ;;  %v1727_v26 = vsel %vm1717_vm11, %v1726_v38, %v1722_v6  ;;  %v1731_v47 = vrot.slane %v4108_v44, %v3928_v43  ;;  %v2028_v24 = vrot.slane %v953_v5, %v3936_v23  ;;  %v955_v25 = vmax.f32 %v939_v52, 0.0 }
 0x1dc   : > { %v845_v50 = vadd.f32 %v758_v37, %v3923_v29  ;;  %v1345_v16 = vrot.slane %v4110_v21, %v3660_v62  ;;  %v2024_v18 = vsel %vm2014_vm12, %v2023_v1, %v2019_v41  ;;  %v1735_v32 = vrot.slane %v4126_v27, %v3962_v2 }
 0x1dd   : > { %v941_v8 = vsub.f32 %v758_v37, %v3923_v29  ;;  %v1782_v31 = vsel %vm1609_vm1, %v1727_v26, %v1718_v30  ;;  %v1359_v10 = vrot.slane %v4124_v61, %v3657_v12  ;;  %v2032_v53 = vrot.slane %v954_v46, %v3965_v63 }
 0x1de   : > { %v844_v40 = vadd.f32 %v756_v3, %v3925_v34  ;;  %v1740_v33 = vrot.slane %v4124_v61, %v3928_v43  ;;  %v940_v5 = vsub.f32 %v756_v3, %v3925_v34  ;;  %v2079_v42 = vsel %vm1609_vm1, %v2024_v18, %v2015_v59 }
 0x1df   : > { %2589 = vset.pattern.permute.xlu1 %v4942_v49  ;;  %v762_v45 = vpop.xlane.xlu1 %761  ;;  %v760_v56 = vpop.xlane.xlu0 %759  ;;  %v2037_v52 = vrot.slane %v955_v25, %v3936_v23  ;;  %v1354_v49 = vrot.slane %v4126_v27, %v3660_v62  ;;  %v4159_v51 = vmul.f32 0.5, %v845_v50  ;;  %v1736_v6 = vsel %vm1717_vm11, %v1735_v32, %v1731_v47 }
 0x1e0   : > { %v847_v29 = vadd.f32 %v762_v45, %v3955_v20  ;;  %v943_v13 = vsub.f32 %v762_v45, %v3955_v20  ;;  %1470 = vperm.xlu1 %2589, %v3933_v55   ;;  %v957_v41 = vmax.f32 %v941_v8, 0.0  ;;  %v4162_v38 = vmul.f32 0.5, %v844_v40 }
 0x1e1   : > { %v956_v34 = vmax.f32 %v940_v5, 0.0  ;;  %v2033_v48 = vsel %vm2014_vm12, %v2032_v53, %v2028_v24  ;;  %v846_v30 = vadd.f32 %v760_v56, %v3957_v54  ;;  %v942_v1 = vsub.f32 %v760_v56, %v3957_v54 }
 0x1e2   : > { %v4165_v20 = vmul.f32 0.5, %v847_v29  ;;  %v1744_v59 = vrot.slane %v4162_v38, %v3962_v2  ;;  %v4172_v46 = vmax.f32 %v943_v13, 0.0  ;;  %v1783_v24 = vsel %vm1611_vm2, %v1736_v6, %v1782_v31 }
 0x1e3   : > { %v766_v37 = vpop.xlane.xlu1 %765  ;;  %v764_v3 = vpop.xlane.xlu0 %763  ;;  %v2041_v26 = vrot.slane %v956_v34, %v3965_v63  ;;  %v1368_v25 = vrot.slane %v4159_v51, %v3657_v12  ;;  %v1749_v54 = vrot.slane %v4159_v51, %v3928_v43  ;;  %v4181_v50 = vmul.f32 0.5, %v846_v30 }
 0x1e4   : > { %v849_v47 = vadd.f32 %v766_v37, %v3986_v39  ;;  %2590 = vset.pattern.permute.xlu1 %v4943_v57  ;;  %v2080_v18 = vsel %vm1611_vm2, %v2033_v48, %v2079_v42  ;;  %v2046_v32 = vrot.slane %v957_v41, %v3936_v23  ;;  %v1745_v8 = vsel %vm1717_vm11, %v1744_v59, %v1740_v33 }
 0x1e5   : > { %1526 = vperm.xlu1 %2590, %v3933_v55   ;;  %v958_v53 = vmax.f32 %v942_v1, 0.0  ;;  %v1363_v57 = vrot.slane %v4162_v38, %v3660_v62  ;;  %v2042_v31 = vsel %vm2014_vm12, %v2041_v26, %v2037_v52  ;;  %v1377_v40 = vrot.slane %v4165_v20, %v3657_v12  ;;  %v4986_v52 = vld [vmem:[#allocation6_spill] sm:$0xff] }
 0x1e6   : > { %v1753_v45 = vrot.slane %v4181_v50, %v3962_v2  ;;  %v1758_v5 = vrot.slane %v4165_v20, %v3928_v43  ;;  %v2055_v33 = vrot.slane %v4172_v46, %v3936_v23  ;;  %v4198_v29 = vmul.f32 0.5, %v849_v47  ;;  %v4987_v38 = vld [vmem:[#allocation18_spill] sm:$0xff] }
 0x1e7   : > { %v770_v56 = vpop.xlane.xlu1 %769  ;;  %v768_v55 = vpop.xlane.xlu0 %767  ;;  %v945_v13 = vsub.f32 %v766_v37, %v3986_v39  ;;  %v1784_v42 = vsel %vm1613_vm3, %v1745_v8, %v1783_v24  ;;  %v848_v6 = vadd.f32 %v764_v3, %v4986_v52  ;;  %v944_v41 = vsub.f32 %v764_v3, %v4986_v52  ;;  %v4988_v39 = vld [vmem:[#allocation30_spill] sm:$0xff] }
 0x1e8   : > { %v851_v34 = vadd.f32 %v770_v56, %v4987_v38  ;;  %v4207_v48 = vsel %vm1613_vm3, %v2042_v31, %v2080_v18  ;;  %v2050_v30 = vrot.slane %v958_v53, %v3965_v63  ;;  %v947_v59 = vsub.f32 %v770_v56, %v4987_v38  ;;  %v4989_v18 = vld [vmem:[#allocation5_spill] sm:$0xff] }
 0x1e9   : > { %2591 = vset.pattern.permute.xlu1 %v4946_v60  ;;  %v4210_v1 = vmax.f32 %v945_v13, 0.0  ;;  %v1372_v37 = vrot.slane %v4181_v50, %v3660_v62  ;;  %v1754_v3 = vsel %vm1717_vm11, %v1753_v45, %v1749_v54  ;;  %v864_v26 = vmul.f32 0.5, %v848_v6 }
 0x1ea   : > { %1306 = vperm.xlu1 %2591, %v4988_v39   ;;  %v960_v46 = vmax.f32 %v944_v41, 0.0  ;;  %v867_v47 = vmul.f32 0.5, %v851_v34  ;;  %v4217_v24 = vmax.f32 %v947_v59, 0.0  ;;  %v850_v8 = vadd.f32 %v768_v55, %v4989_v18  ;;  %v2592_v41 = vld [vmem:[%s3565_s8 + $0x70] sm:$0xff]  ;;  %s2597_s8 = sshll.u32 %s2667_s7, 4  ;;  %s2598_s8 = int_to_ptr.vmem [resolvable:$false] %s2597_s8 }
 0x1eb   : > { %v968_v60 = vpop.permute.xlu1 %967  ;;  %v946_v53 = vsub.f32 %v768_v55, %v4989_v18  ;;  %v772_v31 = vpop.xlane.xlu0 %771  ;;  %v1386_v56 = vrot.slane %v4198_v29, %v3657_v12  ;;  %v1767_v50 = vrot.slane %v4198_v29, %v3928_v43  ;;  %v1762_v54 = vrot.slane %v864_v26, %v3962_v2  ;;  %s2599_s10 = scalar_lea.vmem %s2598_s8, 768  ;;  %p2600_p0 = scmp.lt.s32.totalorder %s4736_s29, %s2598_s8 }
 0x1ec   : > { %v2059_v45 = vrot.slane %v960_v46, %v3965_v63  ;;  %v1785_v13 = vsel %vm1615_vm7, %v1754_v3, %v1784_v42  ;;  %v2051_v52 = vsel %vm2014_vm12, %v2050_v30, %v2046_v32  ;;  %v2064_v6 = vrot.slane %v4210_v1, %v3936_v23  ;;  %p2601_p1 = scmp.lt.s32.totalorder %s2599_s10, %s2593_s6 }
 0x1ed   : > { %v866_v55 = vmul.f32 0.5, %v850_v8  ;;  %v1381_v38 = vrot.slane %v864_v26, %v3660_v62  ;;  %v1763_v34 = vsel %vm1717_vm11, %v1762_v54, %v1758_v5  ;;  %v962_v29 = vmax.f32 %v946_v53, 0.0  ;;  %v4990_v8 = vld [vmem:[#allocation16_spill] sm:$0xff] }
 0x1ee   : > { %1310 = vperm.xlu1 %2591, %v2592_v41   ;;  %v852_v59 = vadd.f32 %v772_v31, %v4032_v15  ;;  %v1395_v42 = vrot.slane %v867_v47, %v3657_v12  ;;  %v1776_v32 = vrot.slane %v867_v47, %v3928_v43  ;;  %v2073_v30 = vrot.slane %v4217_v24, %v3936_v23  ;;  %v4992_v12 = vld [vmem:[#allocation33_spill] sm:$0xff]  ;;  %p2602_p2 = por %p2601_p1, %p2600_p0 }
 0x1ef   : > { %v4235_v39 = vpop.permute.xlu1 %977  ;;  %v1771_v1 = vrot.slane %v866_v55, %v3962_v2  ;;  %vm2235_vm0 = vcmask 523264   ;;  %v2060_v3 = vsel %vm2014_vm12, %v2059_v45, %v2055_v33  ;;  %v1390_v5 = vrot.slane %v866_v55, %v3660_v62 }
 0x1f0   : > { %v868_v26 = vmul.f32 0.5, %v852_v59  ;;  %v948_v46 = vsub.f32 %v772_v31, %v4032_v15  ;;  %vm2237_vm4 = vcmask 654336   ;;  %v1786_v18 = vsel %vm1617_vm8, %v1763_v34, %v1785_v13  ;;  %v4993_v34 = vld [vmem:[#allocation39_spill] sm:$0xff]  ;;  %p2603_p3 = pnand %p2602_p2, %p2596_p13 }
 0x1f1   : > { %v1105_v53 = vsub.f32 %v968_v60, %v4990_v8  ;;  %v4254_v43 = vsel %vm1032_vm5, %v1345_v16, %v1341_v35  ;;  %v4260_v23 = vsel %vm1032_vm5, %v1363_v57, %v1359_v10  ;;  %v2068_v15 = vrot.slane %v962_v29, %v3965_v63  ;;  %v4991_v16 = vld [vmem:[#allocation31_spill] sm:$0xff] }
 0x1f2   : > { %v964_v33 = vmax.f32 %v948_v46, 0.0  ;;  %v1399_v60 = vrot.slane %v868_v26, %v3660_v62  ;;  %v1780_v17 = vrot.slane %v868_v26, %v3962_v2  ;;  %v1772_v21 = vsel %vm1717_vm11, %v1771_v1, %v1767_v50 }
 0x1f3   : > { %v983_v47 = vpop.permute.xlu1 %982  ;;  %v1131_v24 = vpop.permute.xlu0 %1130  ;;  %v4272_v61 = vsel %vm1032_vm5, %v1381_v38, %v1377_v40  ;;  %v4283_v2 = vsel %vm1032_vm5, %v1354_v49, %v1350_v28  ;;  %v4286_v50 = vsel %vm1032_vm5, %v1390_v5, %v1386_v56  ;;  %v1113_v20 = vmul.f32 %v1105_v53, %v1105_v53 }
 0x1f4   : > { %v1108_v35 = vsub.f32 %v983_v47, %v4019_v9  ;;  %v1257_v31 = vsub.f32 %v1131_v24, %v4991_v16  ;;  %v1781_v10 = vsel %vm1717_vm11, %v1780_v17, %v1776_v32  ;;  %v2077_v57 = vrot.slane %v964_v33, %v3965_v63  ;;  %v4994_v32 = vld [vmem:[#allocation35_spill] sm:$0xff]  ;;  %v4995_v33 = vld [vmem:[#allocation32_spill] sm:$0xff]  ;;  %v4996_v17 = vld [vmem:[#allocation37_spill] sm:$0xff] }
 0x1f5   : > { %v4290_v54 = vsel %vm1032_vm5, %v1399_v60, %v1395_v42  ;;  %v4296_v63 = vsel %vm1032_vm5, %v1372_v37, %v1368_v25  ;;  %v2082_v62 = vsel %vm1615_vm7, %v2051_v52, %v4207_v48  ;;  %v2069_v44 = vsel %vm2014_vm12, %v2068_v15, %v2064_v6 }
 0x1f6   : > { %v1265_v40 = vmul.f32 %v1257_v31, %v1257_v31  ;;  %v2230_v49 = vsel %vm2229_vm13, %v4084_v0, %v4091_v4  ;;  %v1787_v56 = vsel %vm1619_vm9, %v1772_v21, %v1786_v18  ;;  %v2078_v45 = vsel %vm2014_vm12, %v2077_v57, %v2073_v30 }
 0x1f7   : > { %v993_v27 = vpop.permute.xlu1 %992  ;;  %v1143_v28 = vpop.permute.xlu0 %1142  ;;  %v1788_v25 = vsel %vm1621_vm10, %v1781_v10, %v1787_v56  ;;  %v2083_v48 = vsel %vm1617_vm8, %v2060_v3, %v2082_v62  ;;  %v1116_v37 = vmul.f32 %v1108_v35, %v1108_v35  ;;  %vm2239_vm5 = vcmask 785408   ;;  %v4998_v56 = vld [vmem:[#allocation36_spill] sm:$0xff] }
 0x1f8   : > { %v1273_v13 = vadd.f32 %v1265_v40, %v1113_v20  ;;  %v1260_v51 = vsub.f32 %v1143_v28, %v4992_v12  ;;  %v2232_v52 = vsel %vm2231_vm14, %v2230_v49, %v1788_v25  ;;  %v1110_v6 = vsub.f32 %v993_v27, %v4045_v58  ;;  %v4997_v20 = vld [vmem:[#allocation34_spill] sm:$0xff] }
 0x1f9   : > { %v2234_v4 = vsel %vm2233_vm15, %v2232_v52, %v4094_v11  ;;  %v2084_v55 = vsel %vm1619_vm9, %v2069_v44, %v2083_v48  ;;  %vm2241_vm6 = vcmask 916480   ;;  %v1107_v24 = vsub.f32 %v4235_v39, %v3977_v7 }
 0x1fa   : > { %v1268_v0 = vmul.f32 %v1260_v51, %v1260_v51  ;;  %v2236_v29 = vsel %vm2235_vm0, %v2234_v4, %v4993_v34  ;;  %v2085_v59 = vsel %vm1621_vm10, %v2078_v45, %v2084_v55  ;;  %v1118_v5 = vmul.f32 %v1110_v6, %v1110_v6  ;;  %v4999_v51 = vld [vmem:[#allocation38_spill] sm:$0xff] }
 0x1fb   : > { %v1003_v41 = vpop.permute.xlu1 %1002  ;;  %v1151_v38 = vpop.permute.xlu0 %1150  ;;  %v2238_v1 = vsel %vm2237_vm4, %v2236_v29, %v2085_v59  ;;  %v1115_v62 = vmul.f32 %v1107_v24, %v1107_v24  ;;  %v5000_v29 = vld [vmem:[#allocation29_spill] sm:$0xff] }
 0x1fc   : > { %v4319_v42 = vadd.f32 %v1268_v0, %v1116_v37  ;;  %v1262_v30 = vsub.f32 %v1151_v38, %v4994_v32  ;;  %v2240_v3 = vsel %vm2239_vm5, %v2238_v1, 0.0  ;;  %v1112_v11 = vsub.f32 %v1003_v41, %v4070_v19 }
 0x1fd   : > { %v2242_v46 = vsel %vm2241_vm6, %v2240_v3, 0.0 }
 0x1fe   : > { %v1270_v26 = vmul.f32 %v1262_v30, %v1262_v30  ;;  %2399 = vst [vmem:[%s4326_s11] sm:$0xff] %v2242_v46  ;;  %v1120_v21 = vmul.f32 %v1112_v11, %v1112_v11 }
 0x1ff   : > { %v1135_v18 = vpop.permute.xlu1 %1134  ;;  %v1159_v53 = vpop.permute.xlu0 %1158 }
 0x200   : > { %v4329_v15 = vadd.f32 %v1270_v26, %v1118_v5  ;;  %v1258_v60 = vsub.f32 %v1135_v18, %v4995_v33  ;;  %v1264_v47 = vsub.f32 %v1159_v53, %v4996_v17 }
 0x202   : > { %v1272_v35 = vmul.f32 %v1264_v47, %v1264_v47  ;;  %v1266_v26 = vmul.f32 %v1258_v60, %v1258_v60 }
 0x203   : > { %v1139_v31 = vpop.permute.xlu1 %1138  ;;  %v4335_v10 = vpop.permute.xlu0 %1506 }
 0x204   : > { %v4337_v57 = vadd.f32 %v1272_v35, %v1120_v21  ;;  %v1259_v40 = vsub.f32 %v1139_v31, %v4997_v20 }
 0x206   : > { %v1267_v44 = vmul.f32 %v1259_v40, %v1259_v40 }
 0x207   : > { %v1147_v27 = vpop.permute.xlu1 %1146  ;;  %v4340_v28 = vpop.permute.xlu0 %1514 }
 0x208   : > { %v4342_v49 = vadd.f32 %v1267_v44, %v1115_v62  ;;  %v4345_v45 = vsub.f32 %v1147_v27, %v4998_v56 }
 0x20b   : > { %v1155_v39 = vpop.permute.xlu1 %1154 }
 0x20c   : > { %v4348_v25 = vsub.f32 %v1155_v39, %v4999_v51  ;;  %v973_v48 = vpop.permute.xlu0 %972 }
 0x20d   : > { %v1106_v59 = vsub.f32 %v973_v48, %v5000_v29 }
 0x20f   : > { %v1114_v3 = vmul.f32 %v1106_v59, %v1106_v59 }
 0x210   : > { %v1283_v37 = vpop.permute.xlu1 %1282  ;;  %v4350_v52 = vpop.permute.xlu0 %987 }
 0x211   : > { %v1409_v6 = vsub.f32 %v1283_v37, %v4105_v22  ;;  %v1274_v53 = vadd.f32 %v1266_v26, %v1114_v3 }
 0x213   : > { %v1417_v0 = vmul.f32 %v1409_v6, %v1409_v6 }
 0x215   : > { %v4353_v4 = vadd.f32 %v1417_v0, %v1273_v13  ;;  %v4355_v55 = vpop.permute.xlu0 %997  ;;  %v1436_v41 = vpop.permute.xlu1 %1435 }
 0x216   : > { %v1473_v46 = vsub.f32 %v1436_v41, %v4990_v8 }
 0x217   : > { %v2110_v62 = vrot.slane %v4353_v4, 1  ;;  %v2127_v44 = vrot.slane %v4353_v4, 2  ;;  %v2161_v60 = vrot.slane %v4353_v4, 4 }
 0x218   : > { %v1481_v35 = vmul.f32 %v1473_v46, %v1473_v46 }
 0x219   : > { %v1441_v38 = vpop.permute.xlu0 %1440 }
 0x21a   : > { %v1499_v34 = vpop.permute.xlu1 %1498 }
 0x21b   : > { %v1529_v5 = vsub.f32 %v1499_v34, %v4991_v16  ;;  %v2144_v16 = vrot.slane %v4353_v4, 3 }
 0x21d   : > { %v4358_v30 = vpop.permute.xlu0 %1465  ;;  %v1537_v47 = vmul.f32 %v1529_v5, %v1529_v5 }
 0x21f   : > { %v1446_v1 = vpop.permute.xlu1 %1445  ;;  %v1545_v8 = vadd.f32 %v1537_v47, %v1481_v35 }
 0x222   : > { %v1287_v11 = vpop.permute.xlu0 %1286 }
 0x223   : > { %v1410_v13 = vsub.f32 %v1287_v11, %v4254_v43 }
 0x224   : > { %v1503_v18 = vpop.permute.xlu1 %1502 }
 0x225   : > { %v1418_v24 = vmul.f32 %v1410_v13, %v1410_v13  ;;  %v1530_v35 = vsub.f32 %v1503_v18, %v4995_v33  ;;  %v1474_v33 = vsub.f32 %v1441_v38, %v5000_v29 }
 0x226   : > { %v1555_v21 = vpop.permute.xlu0 %1554 }
 0x227   : > { %v1426_v31 = vadd.f32 %v1418_v24, %v1274_v53  ;;  %v1585_v40 = vsub.f32 %v1555_v21, %v4105_v22  ;;  %v2178_v22 = vrot.slane %v4353_v4, 5  ;;  %v2195_v24 = vrot.slane %v4353_v4, 6 }
 0x228   : > { %v1475_v21 = vsub.f32 %v1446_v1, %v3977_v7  ;;  %v1531_v7 = vsub.f32 %v4335_v10, %v4997_v20  ;;  %v1482_v29 = vmul.f32 %v1474_v33, %v1474_v33 }
 0x229   : > { %v1593_v27 = vmul.f32 %v1585_v40, %v1585_v40  ;;  %v1451_v39 = vpop.permute.xlu1 %1450  ;;  %v4369_v48 = vsel %vm1609_vm1, %v1426_v31, %v2110_v62  ;;  %v2128_v37 = vrot.slane %v1426_v31, 1  ;;  %v2145_v0 = vrot.slane %v1426_v31, 2 }
 0x22a   : > { %v1295_v6 = vpop.permute.xlu0 %1294  ;;  %v2162_v41 = vrot.slane %v1426_v31, 3  ;;  %v2179_v34 = vrot.slane %v1426_v31, 4  ;;  %v2196_v11 = vrot.slane %v1426_v31, 5  ;;  %v1476_v53 = vsub.f32 %v1451_v39, %v4019_v9 }
 0x22b   : > { %v4372_v59 = vadd.f32 %v1593_v27, %v1545_v8  ;;  %v1412_v3 = vsub.f32 %v1295_v6, %v4260_v23  ;;  %v2129_v5 = vsel %vm1609_vm1, %v2128_v37, %v2127_v44  ;;  %v4377_v26 = vsel %vm1609_vm1, %v2145_v0, %v2144_v16 }
 0x22c   : > { %v4380_v46 = vsel %vm1609_vm1, %v2162_v41, %v2161_v60  ;;  %v4383_v13 = vsel %vm1609_vm1, %v2179_v34, %v2178_v22  ;;  %v4395_v8 = vsel %vm1609_vm1, %v2196_v11, %v2195_v24  ;;  %v2212_v9 = vrot.slane %v4353_v4, 7 }
 0x22d   : > { %v1420_v47 = vmul.f32 %v1412_v3, %v1412_v3  ;;  %v2213_v27 = vrot.slane %v1426_v31, 6  ;;  %v2095_v39 = vrot.slane %v1426_v31, 7  ;;  %v1484_v1 = vmul.f32 %v1476_v53, %v1476_v53 }
 0x22e   : > { %v1567_v40 = vpop.permute.xlu0 %1566  ;;  %v1511_v62 = vpop.permute.xlu1 %1510  ;;  %v1538_v37 = vmul.f32 %v1530_v35, %v1530_v35  ;;  %v1539_v38 = vmul.f32 %v1531_v7, %v1531_v7  ;;  %v4416_v3 = vmul.f32 %v4345_v45, %v4345_v45  ;;  %v4420_v11 = vsub.f32 %v4340_v28, %v4998_v56 }
 0x22f   : > { %v4390_v44 = vadd.f32 %v1420_v47, %v4319_v42  ;;  %v1588_v16 = vsub.f32 %v1567_v40, %v4260_v23  ;;  %v1532_v60 = vsub.f32 %v1511_v62, %v4992_v12  ;;  %v1109_v42 = vsub.f32 %v4350_v52, %v4027_v14 }
 0x230   : > { %v1483_v23 = vmul.f32 %v1475_v21, %v1475_v21  ;;  %v4404_v6 = vsel %vm1609_vm1, %v2213_v27, %v2212_v9  ;;  %v4409_v10 = vsel %vm1609_vm1, %v2095_v39, %v4353_v4  ;;  %v4426_v4 = vsub.f32 %v4355_v55, %v4057_v36 }
 0x231   : > { %v1540_v18 = vmul.f32 %v1532_v60, %v1532_v60  ;;  %v1596_v0 = vmul.f32 %v1588_v16, %v1588_v16  ;;  %v4422_v53 = vmul.f32 %v1109_v42, %v1109_v42  ;;  %v1546_v21 = vadd.f32 %v1538_v37, %v1482_v29 }
 0x232   : > { %v1303_v12 = vpop.permute.xlu0 %1302  ;;  %v4428_v24 = vadd.f32 %v1539_v38, %v1483_v23  ;;  %v2273_v62 = vrot.slane %v4372_v59, 1  ;;  %v2290_v28 = vrot.slane %v4372_v59, 2  ;;  %v2307_v56 = vrot.slane %v4372_v59, 3 }
 0x233   : > { %v1548_v41 = vadd.f32 %v1540_v18, %v1484_v1  ;;  %v1414_v31 = vsub.f32 %v1303_v12, %v4272_v61  ;;  %v1291_v22 = vpop.permute.xlu1 %1290  ;;  %v2131_v16 = vrot.slane %v4390_v44, 7  ;;  %v2324_v55 = vrot.slane %v4372_v59, 4 }
 0x234   : > { %v1411_v20 = vsub.f32 %v1291_v22, %v4283_v2  ;;  %v2341_v60 = vrot.slane %v4372_v59, 5  ;;  %v2358_v9 = vrot.slane %v4372_v59, 6  ;;  %v2114_v7 = vrot.slane %v4390_v44, 6 }
 0x235   : > { %v4412_v52 = vadd.f32 %v1596_v0, %v1548_v41  ;;  %v1422_v34 = vmul.f32 %v1414_v31, %v1414_v31  ;;  %v2166_v18 = vrot.slane %v4390_v44, 1  ;;  %v2200_v22 = vrot.slane %v4390_v44, 3 }
 0x236   : > { %v1419_v47 = vmul.f32 %v1411_v20, %v1411_v20  ;;  %v1575_v42 = vpop.permute.xlu0 %1574  ;;  %v2217_v20 = vrot.slane %v4390_v44, 4 }
 0x237   : > { %v4431_v35 = vadd.f32 %v1422_v34, %v4329_v15  ;;  %v4469_v34 = vsub.f32 %v1575_v42, %v4272_v61 }
 0x238   : > { %v1427_v45 = vadd.f32 %v1419_v47, %v4342_v49  ;;  %v1456_v40 = vpop.permute.xlu1 %1455  ;;  %v2375_v49 = vrot.slane %v4372_v59, 7 }
 0x23a   : > { %v2112_v27 = vrot.slane %v1427_v45, 7  ;;  %v2130_v15 = vsel %vm1611_vm2, %v1427_v45, %v2129_v5  ;;  %v2147_v39 = vrot.slane %v1427_v45, 1  ;;  %v2164_v1 = vrot.slane %v1427_v45, 2 }
 0x23b   : > { %v4445_v33 = vsel %vm1613_vm3, %v2131_v16, %v2130_v15  ;;  %v2181_v12 = vrot.slane %v1427_v45, 3  ;;  %v2183_v5 = vrot.slane %v4390_v44, 2 }
 0x23c   : > { %v2113_v23 = vsel %vm1611_vm2, %v2112_v27, %v4369_v48  ;;  %v2148_v37 = vsel %vm1611_vm2, %v2147_v39, %v4377_v26  ;;  %v2165_v26 = vsel %vm1611_vm2, %v2164_v1, %v4380_v46  ;;  %v2198_v27 = vrot.slane %v1427_v45, 4 }
 0x23d   : > { %v1559_v0 = vpop.permute.xlu1 %1558  ;;  %v4454_v41 = vsel %vm1613_vm3, %v2114_v7, %v2113_v23  ;;  %v4458_v31 = vsel %vm1613_vm3, %v4390_v44, %v2148_v37  ;;  %v2182_v38 = vsel %vm1611_vm2, %v2181_v12, %v4383_v13  ;;  %v4472_v47 = vsel %vm1613_vm3, %v2166_v18, %v2165_v26 }
 0x23e   : > { %v1586_v48 = vsub.f32 %v1559_v0, %v4254_v43  ;;  %v4475_v16 = vsel %vm1613_vm3, %v2183_v5, %v2182_v38  ;;  %v2277_v43 = vrot.slane %v4412_v52, 6  ;;  %v2294_v46 = vrot.slane %v4412_v52, 7 }
 0x23f   : > { %v2215_v39 = vrot.slane %v1427_v45, 5  ;;  %v2329_v13 = vrot.slane %v4412_v52, 1  ;;  %v2346_v1 = vrot.slane %v4412_v52, 2  ;;  %v2199_v61 = vsel %vm1611_vm2, %v2198_v27, %v4395_v8 }
 0x240   : > { %v1594_v15 = vmul.f32 %v1586_v48, %v1586_v48  ;;  %v2097_v18 = vrot.slane %v1427_v45, 6  ;;  %v4485_v37 = vsel %vm1613_vm3, %v2200_v22, %v2199_v61  ;;  %v1477_v5 = vsub.f32 %v1456_v40, %v4027_v14 }
 0x241   : > { %v1563_v7 = vpop.permute.xlu1 %1562  ;;  %v2216_v12 = vsel %vm1611_vm2, %v2215_v39, %v4404_v6  ;;  %v2363_v0 = vrot.slane %v4412_v52, 3  ;;  %v2380_v6 = vrot.slane %v4412_v52, 4 }
 0x242   : > { %v1602_v42 = vadd.f32 %v1594_v15, %v1546_v21  ;;  %v1587_v23 = vsub.f32 %v1563_v7, %v4283_v2  ;;  %v4492_v48 = vsel %vm1613_vm3, %v2217_v20, %v2216_v12  ;;  %v2098_v8 = vsel %vm1611_vm2, %v2097_v18, %v4409_v10 }
 0x244   : > { %v1595_v45 = vmul.f32 %v1587_v23, %v1587_v23  ;;  %v2274_v21 = vsel %vm1609_vm1, %v1602_v42, %v2273_v62  ;;  %v2291_v2 = vrot.slane %v1602_v42, 1  ;;  %v2308_v26 = vrot.slane %v1602_v42, 2 }
 0x245   : > { %v2325_v22 = vrot.slane %v1602_v42, 3  ;;  %v2342_v38 = vrot.slane %v1602_v42, 4  ;;  %v2359_v27 = vrot.slane %v1602_v42, 5  ;;  %v2376_v39 = vrot.slane %v1602_v42, 6 }
 0x246   : > { %v1603_v14 = vadd.f32 %v1595_v45, %v4428_v24  ;;  %v1461_v40 = vpop.permute.xlu1 %1460  ;;  %v2292_v15 = vsel %vm1609_vm1, %v2291_v2, %v2290_v28  ;;  %v2309_v20 = vsel %vm1609_vm1, %v2308_v26, %v2307_v56  ;;  %v2258_v61 = vrot.slane %v1602_v42, 7 }
 0x247   : > { %v2326_v10 = vsel %vm1609_vm1, %v2325_v22, %v2324_v55  ;;  %v2343_v7 = vsel %vm1609_vm1, %v2342_v38, %v2341_v60  ;;  %v2360_v62 = vsel %vm1609_vm1, %v2359_v27, %v2358_v9  ;;  %v1478_v24 = vsub.f32 %v1461_v40, %v4045_v58  ;;  %v1579_v22 = vpop.permute.xlu0 %1578 }
 0x248   : > { %v2275_v18 = vrot.slane %v1603_v14, 7  ;;  %v2293_v23 = vsel %vm1611_vm2, %v1603_v14, %v2292_v15  ;;  %v2310_v12 = vrot.slane %v1603_v14, 1  ;;  %v2327_v29 = vrot.slane %v1603_v14, 2 }
 0x249   : > { %v4507_v45 = vsel %vm1613_vm3, %v2294_v46, %v2293_v23  ;;  %v2344_v28 = vrot.slane %v1603_v14, 3  ;;  %v2361_v56 = vrot.slane %v1603_v14, 4  ;;  %v2377_v9 = vsel %vm1609_vm1, %v2376_v39, %v2375_v49 }
 0x24a   : > { %v2276_v2 = vsel %vm1611_vm2, %v2275_v18, %v2274_v21  ;;  %v2311_v55 = vsel %vm1611_vm2, %v2310_v12, %v2309_v20  ;;  %v2328_v60 = vsel %vm1611_vm2, %v2327_v29, %v2326_v10  ;;  %v2378_v27 = vrot.slane %v1603_v14, 5 }
 0x24b   : > { %v1519_v42 = vpop.permute.xlu1 %1518  ;;  %v4516_v26 = vsel %vm1613_vm3, %v2277_v43, %v2276_v2  ;;  %v4520_v58 = vsel %vm1613_vm3, %v4412_v52, %v2311_v55  ;;  %v4523_v46 = vsel %vm1613_vm3, %v2329_v13, %v2328_v60  ;;  %v2345_v21 = vsel %vm1611_vm2, %v2344_v28, %v2343_v7 }
 0x24c   : > { %v1534_v29 = vsub.f32 %v1519_v42, %v4994_v32  ;;  %v4528_v38 = vsel %vm1613_vm3, %v2346_v1, %v2345_v21  ;;  %v2362_v49 = vsel %vm1611_vm2, %v2361_v56, %v2360_v62  ;;  %v2259_v40 = vsel %vm1609_vm1, %v2258_v61, %v4372_v59 }
 0x24d   : > { %v4532_v43 = vsel %vm1613_vm3, %v2363_v0, %v2362_v49  ;;  %v2260_v15 = vrot.slane %v1603_v14, 6  ;;  %v5001_v13 = vrot.slane %v4390_v44, 5  ;;  %v1486_v39 = vmul.f32 %v1478_v24, %v1478_v24 }
 0x24e   : > { %v1542_v32 = vmul.f32 %v1534_v29, %v1534_v29  ;;  %v2379_v1 = vsel %vm1611_vm2, %v2378_v27, %v2377_v9  ;;  %v2262_v10 = vrot.slane %v4412_v52, 5  ;;  %v1479_v7 = vsub.f32 %v4358_v30, %v4057_v36 }
 0x24f   : > { %v4539_v20 = vsel %vm1613_vm3, %v5001_v13, %v2098_v8  ;;  %v1598_v0 = vmul.f32 %v4469_v34, %v4469_v34  ;;  %v4548_v59 = vsel %vm1613_vm3, %v2380_v6, %v2379_v1  ;;  %v2261_v44 = vsel %vm1611_vm2, %v2260_v15, %v2259_v40 }
 0x250   : > { %v1485_v14 = vmul.f32 %v1477_v5, %v1477_v5  ;;  %v1591_v8 = vsub.f32 %v1579_v22, %v4286_v50  ;;  %v1550_v62 = vadd.f32 %v1542_v32, %v1486_v39  ;;  %v1299_v61 = vpop.permute.xlu1 %1298  ;;  %v4553_v18 = vsel %vm1613_vm3, %v2262_v10, %v2261_v44  ;;  %v1583_v5 = vpop.permute.xlu0 %1582 }
 0x251   : > { %v1413_v52 = vsub.f32 %v1299_v61, %v4296_v63  ;;  %v1541_v36 = vmul.f32 %v4420_v11, %v4420_v11  ;;  %v1277_v30 = vadd.f32 %v4416_v3, %v4422_v53  ;;  %v4562_v34 = vmul.f32 %v4426_v4, %v4426_v4 }
 0x252   : > { %v4564_v6 = vadd.f32 %v1598_v0, %v1550_v62  ;;  %v1487_v23 = vmul.f32 %v1479_v7, %v1479_v7  ;;  %v2118_v24 = vrot.slane %v4431_v35, 4  ;;  %v2135_v28 = vrot.slane %v4431_v35, 5 }
 0x253   : > { %v1421_v12 = vmul.f32 %v1413_v52, %v1413_v52  ;;  %v1549_v56 = vadd.f32 %v1541_v36, %v1485_v14  ;;  %v1599_v2 = vmul.f32 %v1591_v8, %v1591_v8  ;;  %v2152_v11 = vrot.slane %v4431_v35, 6 }
 0x254   : > { %v2169_v55 = vrot.slane %v4431_v35, 7  ;;  %v4571_v3 = vsub.f32 %v1583_v5, %v4290_v54  ;;  %v2204_v60 = vrot.slane %v4431_v35, 1  ;;  %v2221_v9 = vrot.slane %v4431_v35, 2 }
 0x255   : > { %v1429_v53 = vadd.f32 %v1421_v12, %v1277_v30  ;;  %v1523_v4 = vpop.permute.xlu1 %1522  ;;  %v2281_v21 = vrot.slane %v4564_v6, 4  ;;  %v2298_v22 = vrot.slane %v4564_v6, 5  ;;  %v2103_v29 = vrot.slane %v4431_v35, 3 }
 0x256   : > { %v1535_v42 = vsub.f32 %v1523_v4, %v4999_v51  ;;  %v2367_v12 = vrot.slane %v4564_v6, 1 }
 0x257   : > { %v2116_v49 = vrot.slane %v1429_v53, 5  ;;  %v2133_v27 = vrot.slane %v1429_v53, 6  ;;  %v2150_v40 = vrot.slane %v1429_v53, 7  ;;  %v2168_v15 = vsel %vm1615_vm7, %v1429_v53, %v4472_v47 }
 0x258   : > { %v1543_v13 = vmul.f32 %v1535_v42, %v1535_v42  ;;  %v4582_v39 = vsel %vm1617_vm8, %v2169_v55, %v2168_v15  ;;  %v2185_v32 = vrot.slane %v1429_v53, 1  ;;  %v2202_v1 = vrot.slane %v1429_v53, 2 }
 0x259   : > { %v2117_v51 = vsel %vm1615_vm7, %v2116_v49, %v4454_v41  ;;  %v2134_v10 = vsel %vm1615_vm7, %v2133_v27, %v4445_v33  ;;  %v2151_v7 = vsel %vm1615_vm7, %v2150_v40, %v4458_v31  ;;  %v2219_v0 = vrot.slane %v1429_v53, 3 }
 0x25a   : > { %v1551_v44 = vadd.f32 %v1543_v13, %v1487_v23  ;;  %v1571_v14 = vpop.permute.xlu1 %1570  ;;  %v4591_v47 = vsel %vm1617_vm8, %v2118_v24, %v2117_v51  ;;  %v4594_v8 = vsel %vm1617_vm8, %v2135_v28, %v2134_v10  ;;  %v4597_v62 = vsel %vm1617_vm8, %v2152_v11, %v2151_v7 }
 0x25b   : > { %v1589_v41 = vsub.f32 %v1571_v14, %v4296_v63  ;;  %v2186_v33 = vsel %vm1615_vm7, %v2185_v32, %v4475_v16  ;;  %v2203_v31 = vsel %vm1615_vm7, %v2202_v1, %v4485_v37  ;;  %v2220_v61 = vsel %vm1615_vm7, %v2219_v0, %v4492_v48 }
 0x25c   : > { %v4606_v52 = vadd.f32 %v1599_v2, %v1551_v44  ;;  %v4610_v36 = vsel %vm1617_vm8, %v4431_v35, %v2186_v33  ;;  %v4613_v30 = vsel %vm1617_vm8, %v2204_v60, %v2203_v31  ;;  %v4616_v63 = vsel %vm1617_vm8, %v2221_v9, %v2220_v61 }
 0x25d   : > { %v1597_v5 = vmul.f32 %v1589_v41, %v1589_v41  ;;  %v2315_v16 = vrot.slane %v4564_v6, 6  ;;  %v2332_v37 = vrot.slane %v4564_v6, 7  ;;  %v2101_v23 = vrot.slane %v1429_v53, 4 }
 0x25e   : > { %v2283_v48 = vrot.slane %v4606_v52, 3  ;;  %v2384_v24 = vrot.slane %v4564_v6, 2  ;;  %v2266_v28 = vrot.slane %v4564_v6, 3  ;;  %v2300_v55 = vrot.slane %v4606_v52, 4 }
 0x25f   : > { %v1605_v2 = vadd.f32 %v1597_v5, %v1549_v56  ;;  %v1471_v11 = vpop.permute.xlu1 %1470  ;;  %v2317_v4 = vrot.slane %v4606_v52, 5  ;;  %v2334_v60 = vrot.slane %v4606_v52, 6  ;;  %v2351_v53 = vrot.slane %v4606_v52, 7 }
 0x260   : > { %v1480_v9 = vsub.f32 %v1471_v11, %v4070_v19  ;;  %v2386_v42 = vrot.slane %v4606_v52, 1  ;;  %v2102_v49 = vsel %vm1615_vm7, %v2101_v23, %v4539_v20  ;;  %v2268_v23 = vrot.slane %v4606_v52, 2 }
 0x261   : > { %v2279_v27 = vrot.slane %v1605_v2, 5  ;;  %v2296_v40 = vrot.slane %v1605_v2, 6  ;;  %v2313_v15 = vrot.slane %v1605_v2, 7  ;;  %v2331_v56 = vsel %vm1615_vm7, %v1605_v2, %v4523_v46 }
 0x262   : > { %v1488_v13 = vmul.f32 %v1480_v9, %v1480_v9  ;;  %v2333_v32 = vsel %vm1617_vm8, %v2332_v37, %v2331_v56  ;;  %v2348_v1 = vrot.slane %v1605_v2, 1  ;;  %v2365_v51 = vrot.slane %v1605_v2, 2 }
 0x263   : > { %v2280_v19 = vsel %vm1615_vm7, %v2279_v27, %v4516_v26  ;;  %v2297_v10 = vsel %vm1615_vm7, %v2296_v40, %v4507_v45  ;;  %v2314_v20 = vsel %vm1615_vm7, %v2313_v15, %v4520_v58  ;;  %v2335_v7 = vsel %vm1619_vm9, %v2334_v60, %v2333_v32 }
 0x264   : > { %v1527_v0 = vpop.permute.xlu1 %1526  ;;  %v2282_v44 = vsel %vm1617_vm8, %v2281_v21, %v2280_v19  ;;  %v2299_v46 = vsel %vm1617_vm8, %v2298_v22, %v2297_v10  ;;  %v2316_v14 = vsel %vm1617_vm8, %v2315_v16, %v2314_v20  ;;  %v2349_v41 = vsel %vm1615_vm7, %v2348_v1, %v4528_v38 }
 0x265   : > { %v1536_v26 = vsub.f32 %v1527_v0, %v4996_v17  ;;  %v2284_v33 = vsel %vm1619_vm9, %v2283_v48, %v2282_v44  ;;  %v2301_v45 = vsel %vm1619_vm9, %v2300_v55, %v2299_v46  ;;  %v2318_v58 = vsel %vm1619_vm9, %v2317_v4, %v2316_v14 }
 0x266   : > { %v2350_v31 = vsel %vm1617_vm8, %v4564_v6, %v2349_v41  ;;  %v2366_v21 = vsel %vm1615_vm7, %v2365_v51, %v4532_v43  ;;  %v2382_v22 = vrot.slane %v1605_v2, 3  ;;  %v2264_v61 = vrot.slane %v1605_v2, 4 }
 0x267   : > { %v1544_v5 = vmul.f32 %v1536_v26, %v1536_v26  ;;  %v2352_v16 = vsel %vm1619_vm9, %v2351_v53, %v2350_v31  ;;  %v2368_v38 = vsel %vm1617_vm8, %v2367_v12, %v2366_v21  ;;  %v4660_v17 = vsel %vm1617_vm8, %v2103_v29, %v2102_v49 }
 0x268   : > { %v2369_v37 = vsel %vm1619_vm9, %v4606_v52, %v2368_v38  ;;  %v2383_v6 = vsel %vm1615_vm7, %v2382_v22, %v4548_v59  ;;  %v2265_v43 = vsel %vm1615_vm7, %v2264_v61, %v4553_v18  ;;  %v1600_v48 = vmul.f32 %v4571_v3, %v4571_v3 }
 0x269   : > { %v1552_v12 = vadd.f32 %v1544_v5, %v1488_v13  ;;  %v1307_v2 = vpop.permute.xlu1 %1306  ;;  %v2385_v35 = vsel %vm1617_vm8, %v2384_v24, %v2383_v6  ;;  %v2267_v29 = vsel %vm1617_vm8, %v2266_v28, %v2265_v43  ;;  %v1271_v11 = vmul.f32 %v4348_v25, %v4348_v25 }
 0x26a   : > { %v1415_v55 = vsub.f32 %v1307_v2, %v4286_v50  ;;  %v2387_v59 = vsel %vm1619_vm9, %v2386_v42, %v2385_v35  ;;  %v2269_v18 = vsel %vm1619_vm9, %v2268_v23, %v2267_v29 }
 0x26b   : > { %v1608_v4 = vadd.f32 %v1600_v48, %v1552_v12  ;;  %v1279_v52 = vadd.f32 %v1271_v11, %v4562_v34 }
 0x26c   : > { %v1423_v60 = vmul.f32 %v1415_v55, %v1415_v55 }
 0x26d   : > { %v1311_v3 = vpop.permute.xlu1 %1310  ;;  %v2285_v9 = vrot.slane %v1608_v4, 2  ;;  %v2302_v53 = vrot.slane %v1608_v4, 3  ;;  %v2319_v49 = vrot.slane %v1608_v4, 4  ;;  %v2336_v24 = vrot.slane %v1608_v4, 5 }
 0x26e   : > { %v1431_v27 = vadd.f32 %v1423_v60, %v1279_v52  ;;  %v1416_v28 = vsub.f32 %v1311_v3, %v4290_v54  ;;  %v2353_v40 = vrot.slane %v1608_v4, 6  ;;  %v2370_v25 = vrot.slane %v1608_v4, 7 }
 0x26f   : > { %v2286_v50 = vsel %vm1621_vm10, %v2285_v9, %v2284_v33  ;;  %v2303_v42 = vsel %vm1621_vm10, %v2302_v53, %v2301_v45  ;;  %v2320_v15 = vsel %vm1621_vm10, %v2319_v49, %v2318_v58  ;;  %v2337_v56 = vsel %vm1621_vm10, %v2336_v24, %v2335_v7 }
 0x270   : > { %v1424_v34 = vmul.f32 %v1416_v28, %v1416_v28  ;;  %2287 = vrot.lane.b32.xlu0 %v2286_v50, %s2660_s17  ;;  %v2120_v13 = vrot.slane %v1431_v27, 3  ;;  %v2137_v32 = vrot.slane %v1431_v27, 4  ;;  %v2154_v1 = vrot.slane %v1431_v27, 5 }
 0x271   : > { %v2354_v51 = vsel %vm1621_vm10, %v2353_v40, %v2352_v16  ;;  %v2171_v54 = vrot.slane %v1431_v27, 6  ;;  %v2371_v19 = vsel %vm1621_vm10, %v2370_v25, %v2369_v37  ;;  %v2188_v10 = vrot.slane %v1431_v27, 7 }
 0x272   : > { %v1432_v20 = vadd.f32 %v1424_v34, %v4337_v57  ;;  %v2121_v0 = vsel %vm1619_vm9, %v2120_v13, %v4591_v47  ;;  %v2138_v7 = vsel %vm1619_vm9, %v2137_v32, %v4594_v8  ;;  %v2155_v44 = vsel %vm1619_vm9, %v2154_v1, %v4597_v62 }
 0x273   : > { %v2172_v46 = vsel %vm1619_vm9, %v2171_v54, %v4582_v39  ;;  %v2189_v14 = vsel %vm1619_vm9, %v2188_v10, %v4610_v36  ;;  %v2388_v41 = vsel %vm1621_vm10, %v1608_v4, %v2387_v59  ;;  %v2206_v57 = vsel %vm1619_vm9, %v1431_v27, %v4613_v30 }
 0x274   : > { %2304 = vrot.lane.b32.xlu0 %v2303_v42, %s2661_s19  ;;  %v2122_v47 = vrot.slane %v1432_v20, 2  ;;  %v2139_v26 = vrot.slane %v1432_v20, 3  ;;  %v2156_v33 = vrot.slane %v1432_v20, 4  ;;  %v2173_v8 = vrot.slane %v1432_v20, 5 }
 0x275   : > { %v2190_v45 = vrot.slane %v1432_v20, 6  ;;  %v2207_v58 = vrot.slane %v1432_v20, 7  ;;  %v2223_v62 = vrot.slane %v1431_v27, 1  ;;  %v2270_v31 = vrot.slane %v1608_v4, 1 }
 0x276   : > { %v2123_v39 = vsel %vm1621_vm10, %v2122_v47, %v2121_v0  ;;  %v2140_v21 = vsel %vm1621_vm10, %v2139_v26, %v2138_v7  ;;  %v2157_v36 = vsel %vm1621_vm10, %v2156_v33, %v2155_v44  ;;  %v2174_v22 = vsel %vm1621_vm10, %v2173_v8, %v2172_v46 }
 0x277   : > { %2124 = vrot.lane.b32.xlu1 %v2123_v39, %s2660_s17  ;;  %v2191_v30 = vsel %vm1621_vm10, %v2190_v45, %v2189_v14  ;;  %v2208_v61 = vsel %vm1621_vm10, %v2207_v58, %v2206_v57  ;;  %v2224_v5 = vsel %vm1619_vm9, %v2223_v62, %v4616_v63  ;;  %v2271_v16 = vsel %vm1621_vm10, %v2270_v31, %v2269_v18 }
 0x278   : > { %2321 = vrot.lane.b32.xlu0 %v2320_v15, %s2662_s20  ;;  %v2225_v38 = vsel %vm1621_vm10, %v1432_v20, %v2224_v5  ;;  %v2105_v37 = vrot.slane %v1431_v27, 2  ;;  %v2107_v6 = vrot.slane %v1432_v20, 1 }
 0x27a   : > { %v2106_v43 = vsel %vm1619_vm9, %v2105_v37, %v4660_v17 }
 0x27b   : > { %2141 = vrot.lane.b32.xlu1 %v2140_v21, %s2661_s19  ;;  %v2108_v23 = vsel %vm1621_vm10, %v2107_v6, %v2106_v43 }
 0x27c   : > { %2338 = vrot.lane.b32.xlu0 %v2337_v56, %s2663_s24 }
 0x27f   : > { %2158 = vrot.lane.b32.xlu1 %v2157_v36, %s2662_s20 }
 0x280   : > { %2355 = vrot.lane.b32.xlu0 %v2354_v51, %s2664_s25 }
 0x283   : > { %2175 = vrot.lane.b32.xlu1 %v2174_v22, %s2663_s24 }
 0x284   : > { %2372 = vrot.lane.b32.xlu0 %v2371_v19, %s2665_s26 }
 0x287   : > { %2192 = vrot.lane.b32.xlu1 %v2191_v30, %s2664_s25 }
 0x288   : > { %2389 = vrot.lane.b32.xlu0 %v2388_v41, %s2666_s27 }
 0x28b   : > { %2209 = vrot.lane.b32.xlu1 %v2208_v61, %s2665_s26 }
 0x28f   : > { %2226 = vrot.lane.b32.xlu1 %v2225_v38, %s2666_s27 }
 0x2e2   : > { %v2288_v63 = vpop.permute.xlu0 %2287 }
 0x2e3   : > { %v2392_v55 = vsel %vm2229_vm13, %v2271_v16, %v2288_v63 }
 0x2e6   : > { %v2305_v48 = vpop.permute.xlu0 %2304 }
 0x2e7   : > { %v2393_v18 = vsel %vm2231_vm14, %v2392_v55, %v2305_v48 }
 0x2e9   : > { %v2125_v12 = vpop.permute.xlu1 %2124 }
 0x2ea   : > { %v2322_v17 = vpop.permute.xlu0 %2321  ;;  %v2243_v27 = vsel %vm2229_vm13, %v2108_v23, %v2125_v12 }
 0x2eb   : > { %v2394_v52 = vsel %vm2233_vm15, %v2393_v18, %v2322_v17 }
 0x2ed   : > { %v2142_v2 = vpop.permute.xlu1 %2141 }
 0x2ee   : > { %v2339_v35 = vpop.permute.xlu0 %2338  ;;  %v2244_v28 = vsel %vm2231_vm14, %v2243_v27, %v2142_v2 }
 0x2ef   : > { %v2395_v60 = vsel %vm2235_vm0, %v2394_v52, %v2339_v35 }
 0x2f1   : > { %v2159_v29 = vpop.permute.xlu1 %2158 }
 0x2f2   : > { %v2356_v11 = vpop.permute.xlu0 %2355  ;;  %v2245_v25 = vsel %vm2233_vm15, %v2244_v28, %v2159_v29 }
 0x2f3   : > { %v2396_v3 = vsel %vm2237_vm4, %v2395_v60, %v2356_v11 }
 0x2f5   : > { %v2176_v59 = vpop.permute.xlu1 %2175 }
 0x2f6   : > { %v2373_v4 = vpop.permute.xlu0 %2372  ;;  %v2246_v50 = vsel %vm2235_vm0, %v2245_v25, %v2176_v59 }
 0x2f7   : > { %v2397_v53 = vsel %vm2239_vm5, %v2396_v3, %v2373_v4 }
 0x2f9   : > { %v2193_v9 = vpop.permute.xlu1 %2192 }
 0x2fa   : > { %v2390_v49 = vpop.permute.xlu0 %2389  ;;  %v2247_v42 = vsel %vm2237_vm4, %v2246_v50, %v2193_v9 }
 0x2fb   : > { %v2398_v24 = vsel %vm2241_vm6, %v2397_v53, %v2390_v49 }
 0x2fc   : > { %2401 = vst [vmem:[%s4326_s11 + $0x10] sm:$0xff] %v2398_v24 }
 0x2fd   : > { %v2210_v40 = vpop.permute.xlu1 %2209 }
 0x2fe   : > { %v2248_v15 = vsel %vm2239_vm5, %v2247_v42, %v2210_v40 }
 0x301   : > { %v2227_v56 = vpop.permute.xlu1 %2226 }
 0x302   : > { %v2249_v34 = vsel %vm2241_vm6, %v2248_v15, %v2227_v56 }
 0x303   : > { %2400 = vst [vmem:[%s4326_s11 + $0x8] sm:$0xff] %v2249_v34 }
 0x304   : > { %2606 = shalt.err (!%p2603_p3)
}
 0x305   : > { %s2607_s9 = scalar_lea.hbm %s4734_s5, 384  ;;  %s2611_s19 = scalar_lea.hbm %s4783_s3, 768 }
 0x306   : > { %p2608_p4 = scmp.ne.s32.totalorder %s4734_s5, %s2607_s9  ;;  %p2612_p9 = scmp.lt.u32.totalorder %s4734_s5, %s4783_s3 }
 0x307   : > { %p2613_p10 = scmp.lt.u32.totalorder %s2611_s19, %s2607_s9  ;;  %p2615_p12 = scmp.lt.u32.totalorder %s2607_s9, %s4734_s5 }
 0x308   : > { %p2609_p7 = pnand %p2608_p4, %p2726_p5 }
 0x309   : > { %p2614_p11 = por %p2613_p10, %p2612_p9 }
 0x30a   : > { %p2610_p8 = pneg %p2609_p7 }
 0x30b   : > { %p2616_p13 = por %p2615_p12, %p2614_p11 }
 0x30d   : > { %p2617_p0 = pnand %p2616_p13, %p2610_p8 }
 0x30f   : > { %2620 = shalt.err (!%p2617_p0)
}
 0x310   : > { %2519 = dma.vmem_to_hbm [thread:$0]  (%p2726_p5), %s4736_s29, 384, %s4734_s5, %s2403_s16  }
 0x311 PF: > { %p2525_p1 = scmp.ge.s32.totalorder %s2655_s15, 2  ;;  %s2429_s25 = sand.u32 1, %s2643_s12  }
 0x312   : > { %s2430_s26 = scalar_lea.sflag [#allocation3], %s2429_s25 }
 0x313   : > { %p2522_p2 = pnand %p2525_p1, %p2730_p6 }
 0x315   : > { %2638 = dma.done.wait (!%p2522_p2), %s2430_s26, 384  }
 0x316   : > { %2640 = vsyncadd (!%p2522_p2), %s2430_s26, 4294966912  ;;  %p13_p3 = scmp.ge.s32.totalorder %s2713_s18, 4   ;;  %s5002_s12 = smov %s2647_s13 }
 0x317   : > { %s5003_s13 = smov %s2651_s14  ;;  %s5004_s14 = smov %s2724_s21 }
 0x318   : > { %s5005_s15 = smov %s2713_s18  ;;  %15 = sbr.rel (!%p13_p3) target bundleno = 3 (0x3), region = 73 }
 0x31f   :  { %2435 = vsyncpa [#allocation3], 1 }
 0x320   :  { %2437 = vsyncpa [#allocation3 + $0x1], 1 }

</bundles_post_ra>
